<compile_context>
chip_gen: v5e
topology: v5e:2x2
jax: 0.10.0
libtpu: 0.0.40
codegen_flags: <defaults>
</compile_context>

<pallas_src>
import functools

import jax
import jax.numpy as jnp
from jax.experimental import pallas as pl
from jax.experimental.pallas import tpu as pltpu

F32 = jnp.float32


# ----------------------------- kernel helpers -----------------------------

def _conv1d_k3_relu(h, w_ref, b_ref, seq_len):
    """'SAME' Conv1d(k=3) + ReLU on a flattened (TB*seq_len, Cin) activation.

    h:     (M, Cin) value, M = TB * seq_len (samples stacked along rows).
    w_ref: (3*Cin, Cout) ref -- rows [0:Cin) multiply x[t-1], [Cin:2Cin) x[t],
           [2Cin:3Cin) x[t+1] (tap-major, matching the lane concat below).
    b_ref: (1, Cout) ref.
    """
    M, _ = h.shape
    pos = jax.lax.broadcasted_iota(jnp.int32, (M, 1), 0) % seq_len

    # +/-1-row shifts on the XLU; rows that wrapped across a per-sample
    # boundary (or around the whole slab) are zeroed -> 'SAME' zero padding.
    h_prev = jnp.where(pos == 0, 0.0, pltpu.roll(h, 1, axis=0))
    h_next = jnp.where(pos == seq_len - 1, 0.0, pltpu.roll(h, M - 1, axis=0))

    hk = jnp.concatenate([h_prev, h, h_next], axis=1)          # (M, 3*Cin)
    y = jnp.dot(hk, w_ref[...], preferred_element_type=F32) + b_ref[...]
    return jnp.maximum(y, 0.0)


def _maxpool2(y, buf):
    """MaxPool1d(kernel_size=2, stride=2) along the row axis of (M, C)."""
    M = y.shape[0]
    buf[...] = y                                   # single full-ref store
    even = buf[pl.ds(0, M // 2, stride=2), :]      # rows 0, 2, 4, ...
    odd = buf[pl.ds(1, M // 2, stride=2), :]       # rows 1, 3, 5, ...
    return jnp.maximum(even, odd)


# --------------------------------- kernel ----------------------------------

def _learner_kernel(x_ref, w1_ref, b1_ref, w2_ref, b2_ref, w3_ref, b3_ref,
                    w4_ref, b4_ref, w5_ref, b5_ref, feat_ref, proj_ref,
                    pool1_buf, pool2_buf, mean_buf, *, tb, seq_len):
    h = x_ref[...]                                            # (TB*L, Cin_pad)
    h = _conv1d_k3_relu(h, w1_ref, b1_ref, seq_len)           # (TB*L, 32)
    h = _maxpool2(h, pool1_buf)                               # (TB*L/2, 32)
    h = _conv1d_k3_relu(h, w2_ref, b2_ref, seq_len // 2)      # (TB*L/2, 64)
    h = _maxpool2(h, pool2_buf)                               # (TB*L/4, 64)
    h = _conv1d_k3_relu(h, w3_ref, b3_ref, seq_len // 4)      # (TB*L/4, hid)

    # Per-sample mean over the remaining L/4 positions: stage once, then sum
    # lp stride-lp row slices (row s of slice j = position j of sample s).
    lp = seq_len // 4
    mean_buf[...] = h
    acc = mean_buf[pl.ds(0, tb, stride=lp), :]
    for j in range(1, lp):
        acc = acc + mean_buf[pl.ds(j, tb, stride=lp), :]
    feat = acc * (1.0 / lp)                                   # (TB, hidden)
    feat_ref[...] = feat.astype(feat_ref.dtype)

    # Projection head, batched over the tile (w5/b5 are zero-padded to 128
    # output lanes so this store is a full-lane, unmasked vst).
    p = jnp.maximum(
        jnp.dot(feat, w4_ref[...], preferred_element_type=F32) + b4_ref[...],
        0.0)
    p = jnp.dot(p, w5_ref[...], preferred_element_type=F32) + b5_ref[...]
    proj_ref[...] = p.astype(proj_ref.dtype)


# -------------------------------- wrapper ----------------------------------

def _round_up(n, m):
    return -(-n // m) * m


def _pick_batch_tile(batch, seq_len):
    """~1024 activation rows per grid step, but keep >= 2 grid steps when the
    batch allows it so v7x's two TensorCores both get work."""
    tb = max(8, (1024 // seq_len) // 8 * 8)
    half_batch = max(8, _round_up((batch + 1) // 2, 8))
    return min(tb, half_batch)


def contrastive_learner_forward(x, params, *, batch_tile=None):
    """x: (B, L, input_dim) float32 (the torch module's input before its
    internal permute). Returns (features (B, hidden), projections (B, proj))."""
    B, L, cin = x.shape
    assert L % 4 == 0, "L must be divisible by 4 (two MaxPool(2) stages)"
    hidden = params["w3"].shape[-1]
    proj = params["w5"].shape[-1]

    tb = _pick_batch_tile(B, L) if batch_tile is None else batch_tile
    assert tb % 8 == 0, "batch_tile must be a multiple of 8"
    b_pad = pl.cdiv(B, tb) * tb
    cin_pad = _round_up(max(cin, 8), 8)           # lane-friendly channel pad
    proj_pad = _round_up(max(proj, 128), 128)     # lane-dense projection store

    # Host-side layout prep: pad batch & channels, flatten to (B*L, Cin_pad).
    xp = jnp.pad(x.astype(F32), ((0, b_pad - B), (0, 0), (0, cin_pad - cin)))
    x_flat = xp.reshape(b_pad * L, cin_pad)

    # Tap-fused conv weights: (3, Cin, Cout) -> (3*Cin, Cout), tap-major rows.
    w1 = jnp.pad(params["w1"], ((0, 0), (0, cin_pad - cin), (0, 0)))
    w1 = w1.reshape(3 * cin_pad, -1)
    w2 = params["w2"].reshape(3 * params["w2"].shape[1], -1)
    w3 = params["w3"].reshape(3 * params["w3"].shape[1], -1)
    w5 = jnp.pad(params["w5"], ((0, 0), (0, proj_pad - proj)))
    b5 = jnp.pad(params["b5"], ((0, 0), (0, proj_pad - proj)))
    weights = [w1, params["b1"], w2, params["b2"], w3, params["b3"],
               params["w4"], params["b4"], w5, b5]

    in_specs = [pl.BlockSpec((tb * L, cin_pad), lambda i: (i, 0))]
    for w in weights:
        # Constant index maps -> weight blocks stay resident across grid steps.
        in_specs.append(pl.BlockSpec(w.shape, lambda i: (0, 0)))

    c1 = w1.shape[-1]     # 32
    c2 = w2.shape[-1]     # 64
    out_shapes = (jax.ShapeDtypeStruct((b_pad, hidden), F32),
                  jax.ShapeDtypeStruct((b_pad, proj_pad), F32))
    out_specs = [pl.BlockSpec((tb, hidden), lambda i: (i, 0)),
                 pl.BlockSpec((tb, proj_pad), lambda i: (i, 0))]

    # Scratch sized exactly from the staged activations (pool inputs + mean).
    scratch = [pltpu.VMEM((tb * L, c1), F32),
               pltpu.VMEM((tb * L // 2, c2), F32),
               pltpu.VMEM((tb * L // 4, hidden), F32)]

    kernel = functools.partial(_learner_kernel, tb=tb, seq_len=L)
    feat, proj_out = pl.pallas_call(
        kernel,
        out_shape=out_shapes,
        grid=(b_pad // tb,),
        in_specs=in_specs,
        out_specs=out_specs,
        scratch_shapes=scratch,
        compiler_params=pltpu.CompilerParams(
            dimension_semantics=("parallel",),
            vmem_limit_bytes=32 * 1024 * 1024),
    )(x_flat, *weights)
    return feat[:B], proj_out[:B, :proj]


# ---------------------- deterministic parameter init -----------------------

def init_params(key, input_dim=3, hidden_dim=128, projection_dim=64):
    ks = jax.random.split(key, 10)

    def mk(k, shape, fan_in):
        return (jax.random.normal(k, shape, F32) / jnp.sqrt(fan_in)).astype(F32)

    return dict(
        # conv weights stored as (k=3, Cin, Cout); taps 0/1/2 -> x[t-1]/x[t]/x[t+1]
        w1=mk(ks[0], (3, input_dim, 32), 3 * input_dim),
        b1=mk(ks[1], (1, 32), 32),
        w2=mk(ks[2], (3, 32, 64), 3 * 32),
        b2=mk(ks[3], (1, 64), 64),
        w3=mk(ks[4], (3, 64, hidden_dim), 3 * 64),
        b3=mk(ks[5], (1, hidden_dim), hidden_dim),
        # linear weights stored as (in, out)
        w4=mk(ks[6], (hidden_dim, hidden_dim), hidden_dim),
        b4=mk(ks[7], (1, hidden_dim), hidden_dim),
        w5=mk(ks[8], (hidden_dim, projection_dim), hidden_dim),
        b5=mk(ks[9], (1, projection_dim), hidden_dim),
    )


# ------------------------- pure-JAX reference model -------------------------

def reference_forward(x, params):
    def conv_relu(h, w, b):
        hp = jnp.pad(h, ((0, 0), (1, 1), (0, 0)))
        y = (hp[:, :-2] @ w[0] + hp[:, 1:-1] @ w[1] + hp[:, 2:] @ w[2]) + b
        return jax.nn.relu(y)

    def pool(h):
        B, L, C = h.shape
        return jnp.max(h.reshape(B, L // 2, 2, C), axis=2)

    h = conv_relu(x, params["w1"], params["b1"]); h = pool(h)
    h = conv_relu(h, params["w2"], params["b2"]); h = pool(h)
    h = conv_relu(h, params["w3"], params["b3"])
    feat = jnp.mean(h, axis=1)
    p = jax.nn.relu(feat @ params["w4"] + params["b4"]) @ params["w5"] + params["b5"]
    return feat, p


# ----------------------------------- main -----------------------------------

if __name__ == "__main__":
    key = jax.random.PRNGKey(0)
    k_x, k_p = jax.random.split(key)

    B, L, input_dim = 16, 16, 3
    hidden_dim, projection_dim = 128, 64

    x = jax.random.normal(k_x, (B, L, input_dim), dtype=F32)
    params = init_params(k_p, input_dim, hidden_dim, projection_dim)

    # Auto tile: picks TB=8 here -> grid of 2 parallel steps (both v7x TCs);
    # for larger batches it grows toward ~1024 activation rows per step.
    feat, proj = contrastive_learner_forward(x, params)
    feat, proj = jax.block_until_ready((feat, proj))

    feat_ref, proj_ref = reference_forward(x, params)
    assert feat.shape == (B, hidden_dim) and proj.shape == (B, projection_dim)
    assert jnp.allclose(feat, feat_ref, rtol=1e-4, atol=1e-4)
    assert jnp.allclose(proj, proj_ref, rtol=1e-4, atol=1e-4)

    print("KERNEL_OK")
</pallas_src>

<mosaic_0001>
module attributes {stable_mosaic.version = 11 : i64} {
  func.func @_learner_kernel(%arg0: i32, %arg1: memref<128x8xf32, #tpu.memory_space<vmem>>, %arg2: memref<24x32xf32, #tpu.memory_space<vmem>>, %arg3: memref<1x32xf32, #tpu.memory_space<vmem>>, %arg4: memref<96x64xf32, #tpu.memory_space<vmem>>, %arg5: memref<1x64xf32, #tpu.memory_space<vmem>>, %arg6: memref<192x128xf32, #tpu.memory_space<vmem>>, %arg7: memref<1x128xf32, #tpu.memory_space<vmem>>, %arg8: memref<128x128xf32, #tpu.memory_space<vmem>>, %arg9: memref<1x128xf32, #tpu.memory_space<vmem>>, %arg10: memref<128x128xf32, #tpu.memory_space<vmem>>, %arg11: memref<1x128xf32, #tpu.memory_space<vmem>>, %arg12: memref<8x128xf32, #tpu.memory_space<vmem>>, %arg13: memref<8x128xf32, #tpu.memory_space<vmem>>, %arg14: memref<128x32xf32, #tpu.memory_space<vmem>>, %arg15: memref<64x64xf32, #tpu.memory_space<vmem>>, %arg16: memref<32x128xf32, #tpu.memory_space<vmem>>) attributes {dimension_semantics = [#tpu.dimension_semantics<parallel>], iteration_bounds = array<i64: 2>, scalar_prefetch = 0 : i64, scratch_operands = 3 : i64, tpu.core_type = #tpu.core_type<tc>, window_params = [{transform_indices = @transform_0, window_bounds = array<i64: 128, 8>}, {pipeline_mode = #tpu.pipeline_mode<synchronous>, transform_indices = @transform_1, window_bounds = array<i64: 24, 32>}, {pipeline_mode = #tpu.pipeline_mode<synchronous>, transform_indices = @transform_2, window_bounds = array<i64: 1, 32>}, {pipeline_mode = #tpu.pipeline_mode<synchronous>, transform_indices = @transform_3, window_bounds = array<i64: 96, 64>}, {pipeline_mode = #tpu.pipeline_mode<synchronous>, transform_indices = @transform_4, window_bounds = array<i64: 1, 64>}, {pipeline_mode = #tpu.pipeline_mode<synchronous>, transform_indices = @transform_5, window_bounds = array<i64: 192, 128>}, {pipeline_mode = #tpu.pipeline_mode<synchronous>, transform_indices = @transform_6, window_bounds = array<i64: 1, 128>}, {pipeline_mode = #tpu.pipeline_mode<synchronous>, transform_indices = @transform_7, window_bounds = array<i64: 128, 128>}, {pipeline_mode = #tpu.pipeline_mode<synchronous>, transform_indices = @transform_8, window_bounds = array<i64: 1, 128>}, {pipeline_mode = #tpu.pipeline_mode<synchronous>, transform_indices = @transform_9, window_bounds = array<i64: 128, 128>}, {pipeline_mode = #tpu.pipeline_mode<synchronous>, transform_indices = @transform_10, window_bounds = array<i64: 1, 128>}, {transform_indices = @transform_11, window_bounds = array<i64: 8, 128>}, {transform_indices = @transform_12, window_bounds = array<i64: 8, 128>}]} {
    %c0 = arith.constant 0 : index
    %c0_0 = arith.constant 0 : index
    %0 = vector.load %arg1[%c0, %c0_0] : memref<128x8xf32, #tpu.memory_space<vmem>>, vector<128x8xf32>
    %1 = tpu.iota {dimensions = array<i32: 0>} : vector<128x1xi32>
    %c16_i32 = arith.constant 16 : i32
    %c0_i32 = arith.constant 0 : i32
    %2 = arith.cmpi eq, %c16_i32, %c0_i32 : i32
    %c1_i32 = arith.constant 1 : i32
    %3 = arith.select %2, %c1_i32, %c16_i32 : i32
    %4 = vector.broadcast %3 : i32 to vector<128x1xi32>
    %5 = arith.remsi %1, %4 : vector<128x1xi32>
    %c0_i32_1 = arith.constant 0 : i32
    %6 = vector.broadcast %c0_i32_1 : i32 to vector<128x1xi32>
    %7 = arith.cmpi ne, %5, %6 : vector<128x1xi32>
    %c0_i32_2 = arith.constant 0 : i32
    %8 = vector.broadcast %c0_i32_2 : i32 to vector<128x1xi32>
    %9 = arith.cmpi slt, %5, %8 : vector<128x1xi32>
    %c0_i32_3 = arith.constant 0 : i32
    %10 = arith.cmpi slt, %3, %c0_i32_3 : i32
    %11 = vector.broadcast %10 : i1 to vector<128x1xi1>
    %12 = vector.broadcast %11 : vector<128x1xi1> to vector<128x1xi1>
    %13 = arith.xori %9, %12 : vector<128x1xi1>
    %14 = arith.andi %13, %7 : vector<128x1xi1>
    %15 = vector.broadcast %3 : i32 to vector<128x1xi32>
    %16 = arith.addi %5, %15 : vector<128x1xi32>
    %17 = arith.select %14, %16, %5 : vector<128x1xi1>, vector<128x1xi32>
    %c0_i32_4 = arith.constant 0 : i32
    %18 = vector.broadcast %c0_i32_4 : i32 to vector<128x1xi32>
    %19 = arith.cmpi eq, %17, %18 : vector<128x1xi32>
    %c1_i32_5 = arith.constant 1 : i32
    %20 = tpu.dynamic_rotate %0 by %c1_i32_5 dim 0 : vector<128x8xf32>, i32 -> vector<128x8xf32>
    %cst = arith.constant 0.000000e+00 : f32
    %21 = vector.shape_cast %19 : vector<128x1xi1> to vector<128x1xi1>
    %22 = vector.broadcast %21 : vector<128x1xi1> to vector<128x8xi1>
    %23 = vector.broadcast %cst : f32 to vector<128x8xf32>
    %24 = arith.select %22, %23, %20 : vector<128x8xi1>, vector<128x8xf32>
    %c15_i32 = arith.constant 15 : i32
    %25 = vector.broadcast %c15_i32 : i32 to vector<128x1xi32>
    %26 = arith.cmpi eq, %17, %25 : vector<128x1xi32>
    %c127_i32 = arith.constant 127 : i32
    %27 = tpu.dynamic_rotate %0 by %c127_i32 dim 0 : vector<128x8xf32>, i32 -> vector<128x8xf32>
    %cst_6 = arith.constant 0.000000e+00 : f32
    %28 = vector.shape_cast %26 : vector<128x1xi1> to vector<128x1xi1>
    %29 = vector.broadcast %28 : vector<128x1xi1> to vector<128x8xi1>
    %30 = vector.broadcast %cst_6 : f32 to vector<128x8xf32>
    %31 = arith.select %29, %30, %27 : vector<128x8xi1>, vector<128x8xf32>
    %32 = tpu.concatenate %24, %0, %31 in 1 : vector<128x8xf32>, vector<128x8xf32>, vector<128x8xf32> -> vector<128x24xf32>
    %c0_7 = arith.constant 0 : index
    %c0_8 = arith.constant 0 : index
    %33 = vector.load %arg2[%c0_7, %c0_8] : memref<24x32xf32, #tpu.memory_space<vmem>>, vector<24x32xf32>
    %cst_9 = arith.constant dense<0.000000e+00> : vector<128x32xf32>
    %34 = tpu.matmul %32, %33, %cst_9 {dimension_numbers = #tpu.dot_dimension_numbers<[1], [0], [0], [1], [0, 0, 1, 1], [], []>} : vector<128x24xf32>, vector<24x32xf32>, vector<128x32xf32> -> vector<128x32xf32>
    %c0_10 = arith.constant 0 : index
    %c0_11 = arith.constant 0 : index
    %35 = vector.load %arg3[%c0_10, %c0_11] : memref<1x32xf32, #tpu.memory_space<vmem>>, vector<1x32xf32>
    %36 = vector.broadcast %35 : vector<1x32xf32> to vector<128x32xf32>
    %37 = arith.addf %34, %36 : vector<128x32xf32>
    %cst_12 = arith.constant 0.000000e+00 : f32
    %38 = vector.broadcast %cst_12 : f32 to vector<128x32xf32>
    %39 = arith.maximumf %37, %38 : vector<128x32xf32>
    %c0_13 = arith.constant 0 : index
    %c0_14 = arith.constant 0 : index
    %40 = vector.load %arg14[%c0_13, %c0_14] : memref<128x32xf32, #tpu.memory_space<vmem>>, vector<128x32xf32>
    tpu.vector_store %arg14[%c0_13, %c0_14], %39 {strides = array<i32>} : memref<128x32xf32, #tpu.memory_space<vmem>>, vector<128x32xf32>,
    %c0_15 = arith.constant 0 : index
    %c0_16 = arith.constant 0 : index
    %41 = tpu.strided_load %arg14[%c0_15, %c0_16] {strides = array<i32: 2, 1>} : memref<128x32xf32, #tpu.memory_space<vmem>>, vector<64x32xf32>
    %c1 = arith.constant 1 : index
    %c0_17 = arith.constant 0 : index
    %42 = tpu.strided_load %arg14[%c1, %c0_17] {strides = array<i32: 2, 1>} : memref<128x32xf32, #tpu.memory_space<vmem>>, vector<64x32xf32>
    %43 = arith.maximumf %41, %42 : vector<64x32xf32>
    %44 = tpu.iota {dimensions = array<i32: 0>} : vector<64x1xi32>
    %c8_i32 = arith.constant 8 : i32
    %c0_i32_18 = arith.constant 0 : i32
    %45 = arith.cmpi eq, %c8_i32, %c0_i32_18 : i32
    %c1_i32_19 = arith.constant 1 : i32
    %46 = arith.select %45, %c1_i32_19, %c8_i32 : i32
    %47 = vector.broadcast %46 : i32 to vector<64x1xi32>
    %48 = arith.remsi %44, %47 : vector<64x1xi32>
    %c0_i32_20 = arith.constant 0 : i32
    %49 = vector.broadcast %c0_i32_20 : i32 to vector<64x1xi32>
    %50 = arith.cmpi ne, %48, %49 : vector<64x1xi32>
    %c0_i32_21 = arith.constant 0 : i32
    %51 = vector.broadcast %c0_i32_21 : i32 to vector<64x1xi32>
    %52 = arith.cmpi slt, %48, %51 : vector<64x1xi32>
    %c0_i32_22 = arith.constant 0 : i32
    %53 = arith.cmpi slt, %46, %c0_i32_22 : i32
    %54 = vector.broadcast %53 : i1 to vector<64x1xi1>
    %55 = vector.broadcast %54 : vector<64x1xi1> to vector<64x1xi1>
    %56 = arith.xori %52, %55 : vector<64x1xi1>
    %57 = arith.andi %56, %50 : vector<64x1xi1>
    %58 = vector.broadcast %46 : i32 to vector<64x1xi32>
    %59 = arith.addi %48, %58 : vector<64x1xi32>
    %60 = arith.select %57, %59, %48 : vector<64x1xi1>, vector<64x1xi32>
    %c0_i32_23 = arith.constant 0 : i32
    %61 = vector.broadcast %c0_i32_23 : i32 to vector<64x1xi32>
    %62 = arith.cmpi eq, %60, %61 : vector<64x1xi32>
    %c1_i32_24 = arith.constant 1 : i32
    %63 = tpu.dynamic_rotate %43 by %c1_i32_24 dim 0 : vector<64x32xf32>, i32 -> vector<64x32xf32>
    %cst_25 = arith.constant 0.000000e+00 : f32
    %64 = vector.shape_cast %62 : vector<64x1xi1> to vector<64x1xi1>
    %65 = vector.broadcast %64 : vector<64x1xi1> to vector<64x32xi1>
    %66 = vector.broadcast %cst_25 : f32 to vector<64x32xf32>
    %67 = arith.select %65, %66, %63 : vector<64x32xi1>, vector<64x32xf32>
    %c7_i32 = arith.constant 7 : i32
    %68 = vector.broadcast %c7_i32 : i32 to vector<64x1xi32>
    %69 = arith.cmpi eq, %60, %68 : vector<64x1xi32>
    %c63_i32 = arith.constant 63 : i32
    %70 = tpu.dynamic_rotate %43 by %c63_i32 dim 0 : vector<64x32xf32>, i32 -> vector<64x32xf32>
    %cst_26 = arith.constant 0.000000e+00 : f32
    %71 = vector.shape_cast %69 : vector<64x1xi1> to vector<64x1xi1>
    %72 = vector.broadcast %71 : vector<64x1xi1> to vector<64x32xi1>
    %73 = vector.broadcast %cst_26 : f32 to vector<64x32xf32>
    %74 = arith.select %72, %73, %70 : vector<64x32xi1>, vector<64x32xf32>
    %75 = tpu.concatenate %67, %43, %74 in 1 : vector<64x32xf32>, vector<64x32xf32>, vector<64x32xf32> -> vector<64x96xf32>
    %c0_27 = arith.constant 0 : index
    %c0_28 = arith.constant 0 : index
    %76 = vector.load %arg4[%c0_27, %c0_28] : memref<96x64xf32, #tpu.memory_space<vmem>>, vector<96x64xf32>
    %cst_29 = arith.constant dense<0.000000e+00> : vector<64x64xf32>
    %77 = tpu.matmul %75, %76, %cst_29 {dimension_numbers = #tpu.dot_dimension_numbers<[1], [0], [0], [1], [0, 0, 1, 1], [], []>} : vector<64x96xf32>, vector<96x64xf32>, vector<64x64xf32> -> vector<64x64xf32>
    %c0_30 = arith.constant 0 : index
    %c0_31 = arith.constant 0 : index
    %78 = vector.load %arg5[%c0_30, %c0_31] : memref<1x64xf32, #tpu.memory_space<vmem>>, vector<1x64xf32>
    %79 = vector.broadcast %78 : vector<1x64xf32> to vector<64x64xf32>
    %80 = arith.addf %77, %79 : vector<64x64xf32>
    %cst_32 = arith.constant 0.000000e+00 : f32
    %81 = vector.broadcast %cst_32 : f32 to vector<64x64xf32>
    %82 = arith.maximumf %80, %81 : vector<64x64xf32>
    %c0_33 = arith.constant 0 : index
    %c0_34 = arith.constant 0 : index
    %83 = vector.load %arg15[%c0_33, %c0_34] : memref<64x64xf32, #tpu.memory_space<vmem>>, vector<64x64xf32>
    tpu.vector_store %arg15[%c0_33, %c0_34], %82 {strides = array<i32>} : memref<64x64xf32, #tpu.memory_space<vmem>>, vector<64x64xf32>,
    %c0_35 = arith.constant 0 : index
    %c0_36 = arith.constant 0 : index
    %84 = tpu.strided_load %arg15[%c0_35, %c0_36] {strides = array<i32: 2, 1>} : memref<64x64xf32, #tpu.memory_space<vmem>>, vector<32x64xf32>
    %c1_37 = arith.constant 1 : index
    %c0_38 = arith.constant 0 : index
    %85 = tpu.strided_load %arg15[%c1_37, %c0_38] {strides = array<i32: 2, 1>} : memref<64x64xf32, #tpu.memory_space<vmem>>, vector<32x64xf32>
    %86 = arith.maximumf %84, %85 : vector<32x64xf32>
    %87 = tpu.iota {dimensions = array<i32: 0>} : vector<32x1xi32>
    %c4_i32 = arith.constant 4 : i32
    %c0_i32_39 = arith.constant 0 : i32
    %88 = arith.cmpi eq, %c4_i32, %c0_i32_39 : i32
    %c1_i32_40 = arith.constant 1 : i32
    %89 = arith.select %88, %c1_i32_40, %c4_i32 : i32
    %90 = vector.broadcast %89 : i32 to vector<32x1xi32>
    %91 = arith.remsi %87, %90 : vector<32x1xi32>
    %c0_i32_41 = arith.constant 0 : i32
    %92 = vector.broadcast %c0_i32_41 : i32 to vector<32x1xi32>
    %93 = arith.cmpi ne, %91, %92 : vector<32x1xi32>
    %c0_i32_42 = arith.constant 0 : i32
    %94 = vector.broadcast %c0_i32_42 : i32 to vector<32x1xi32>
    %95 = arith.cmpi slt, %91, %94 : vector<32x1xi32>
    %c0_i32_43 = arith.constant 0 : i32
    %96 = arith.cmpi slt, %89, %c0_i32_43 : i32
    %97 = vector.broadcast %96 : i1 to vector<32x1xi1>
    %98 = vector.broadcast %97 : vector<32x1xi1> to vector<32x1xi1>
    %99 = arith.xori %95, %98 : vector<32x1xi1>
    %100 = arith.andi %99, %93 : vector<32x1xi1>
    %101 = vector.broadcast %89 : i32 to vector<32x1xi32>
    %102 = arith.addi %91, %101 : vector<32x1xi32>
    %103 = arith.select %100, %102, %91 : vector<32x1xi1>, vector<32x1xi32>
    %c0_i32_44 = arith.constant 0 : i32
    %104 = vector.broadcast %c0_i32_44 : i32 to vector<32x1xi32>
    %105 = arith.cmpi eq, %103, %104 : vector<32x1xi32>
    %c1_i32_45 = arith.constant 1 : i32
    %106 = tpu.dynamic_rotate %86 by %c1_i32_45 dim 0 : vector<32x64xf32>, i32 -> vector<32x64xf32>
    %cst_46 = arith.constant 0.000000e+00 : f32
    %107 = vector.shape_cast %105 : vector<32x1xi1> to vector<32x1xi1>
    %108 = vector.broadcast %107 : vector<32x1xi1> to vector<32x64xi1>
    %109 = vector.broadcast %cst_46 : f32 to vector<32x64xf32>
    %110 = arith.select %108, %109, %106 : vector<32x64xi1>, vector<32x64xf32>
    %c3_i32 = arith.constant 3 : i32
    %111 = vector.broadcast %c3_i32 : i32 to vector<32x1xi32>
    %112 = arith.cmpi eq, %103, %111 : vector<32x1xi32>
    %c31_i32 = arith.constant 31 : i32
    %113 = tpu.dynamic_rotate %86 by %c31_i32 dim 0 : vector<32x64xf32>, i32 -> vector<32x64xf32>
    %cst_47 = arith.constant 0.000000e+00 : f32
    %114 = vector.shape_cast %112 : vector<32x1xi1> to vector<32x1xi1>
    %115 = vector.broadcast %114 : vector<32x1xi1> to vector<32x64xi1>
    %116 = vector.broadcast %cst_47 : f32 to vector<32x64xf32>
    %117 = arith.select %115, %116, %113 : vector<32x64xi1>, vector<32x64xf32>
    %118 = tpu.concatenate %110, %86, %117 in 1 : vector<32x64xf32>, vector<32x64xf32>, vector<32x64xf32> -> vector<32x192xf32>
    %c0_48 = arith.constant 0 : index
    %c0_49 = arith.constant 0 : index
    %119 = vector.load %arg6[%c0_48, %c0_49] : memref<192x128xf32, #tpu.memory_space<vmem>>, vector<192x128xf32>
    %cst_50 = arith.constant dense<0.000000e+00> : vector<32x128xf32>
    %120 = tpu.matmul %118, %119, %cst_50 {dimension_numbers = #tpu.dot_dimension_numbers<[1], [0], [0], [1], [0, 0, 1, 1], [], []>} : vector<32x192xf32>, vector<192x128xf32>, vector<32x128xf32> -> vector<32x128xf32>
    %c0_51 = arith.constant 0 : index
    %c0_52 = arith.constant 0 : index
    %121 = vector.load %arg7[%c0_51, %c0_52] : memref<1x128xf32, #tpu.memory_space<vmem>>, vector<1x128xf32>
    %122 = vector.broadcast %121 : vector<1x128xf32> to vector<32x128xf32>
    %123 = arith.addf %120, %122 : vector<32x128xf32>
    %cst_53 = arith.constant 0.000000e+00 : f32
    %124 = vector.broadcast %cst_53 : f32 to vector<32x128xf32>
    %125 = arith.maximumf %123, %124 : vector<32x128xf32>
    %c0_54 = arith.constant 0 : index
    %c0_55 = arith.constant 0 : index
    %126 = vector.load %arg16[%c0_54, %c0_55] : memref<32x128xf32, #tpu.memory_space<vmem>>, vector<32x128xf32>
    tpu.vector_store %arg16[%c0_54, %c0_55], %125 {strides = array<i32>} : memref<32x128xf32, #tpu.memory_space<vmem>>, vector<32x128xf32>,
    %c0_56 = arith.constant 0 : index
    %c0_57 = arith.constant 0 : index
    %127 = tpu.strided_load %arg16[%c0_56, %c0_57] {strides = array<i32: 4, 1>} : memref<32x128xf32, #tpu.memory_space<vmem>>, vector<8x128xf32>
    %c1_58 = arith.constant 1 : index
    %c0_59 = arith.constant 0 : index
    %128 = tpu.strided_load %arg16[%c1_58, %c0_59] {strides = array<i32: 4, 1>} : memref<32x128xf32, #tpu.memory_space<vmem>>, vector<8x128xf32>
    %129 = arith.addf %127, %128 : vector<8x128xf32>
    %c2 = arith.constant 2 : index
    %c0_60 = arith.constant 0 : index
    %130 = tpu.strided_load %arg16[%c2, %c0_60] {strides = array<i32: 4, 1>} : memref<32x128xf32, #tpu.memory_space<vmem>>, vector<8x128xf32>
    %131 = arith.addf %129, %130 : vector<8x128xf32>
    %c3 = arith.constant 3 : index
    %c0_61 = arith.constant 0 : index
    %132 = tpu.strided_load %arg16[%c3, %c0_61] {strides = array<i32: 4, 1>} : memref<32x128xf32, #tpu.memory_space<vmem>>, vector<8x128xf32>
    %133 = arith.addf %131, %132 : vector<8x128xf32>
    %cst_62 = arith.constant 2.500000e-01 : f32
    %134 = vector.broadcast %cst_62 : f32 to vector<8x128xf32>
    %135 = arith.mulf %133, %134 : vector<8x128xf32>
    %c0_63 = arith.constant 0 : index
    %c0_64 = arith.constant 0 : index
    %136 = vector.load %arg12[%c0_63, %c0_64] : memref<8x128xf32, #tpu.memory_space<vmem>>, vector<8x128xf32>
    tpu.vector_store %arg12[%c0_63, %c0_64], %135 {strides = array<i32>} : memref<8x128xf32, #tpu.memory_space<vmem>>, vector<8x128xf32>,
    %c0_65 = arith.constant 0 : index
    %c0_66 = arith.constant 0 : index
    %137 = vector.load %arg8[%c0_65, %c0_66] : memref<128x128xf32, #tpu.memory_space<vmem>>, vector<128x128xf32>
    %cst_67 = arith.constant dense<0.000000e+00> : vector<8x128xf32>
    %138 = tpu.matmul %135, %137, %cst_67 {dimension_numbers = #tpu.dot_dimension_numbers<[1], [0], [0], [1], [0, 0, 1, 1], [], []>} : vector<8x128xf32>, vector<128x128xf32>, vector<8x128xf32> -> vector<8x128xf32>
    %c0_68 = arith.constant 0 : index
    %c0_69 = arith.constant 0 : index
    %139 = vector.load %arg9[%c0_68, %c0_69] : memref<1x128xf32, #tpu.memory_space<vmem>>, vector<1x128xf32>
    %140 = vector.broadcast %139 : vector<1x128xf32> to vector<8x128xf32>
    %141 = arith.addf %138, %140 : vector<8x128xf32>
    %cst_70 = arith.constant 0.000000e+00 : f32
    %142 = vector.broadcast %cst_70 : f32 to vector<8x128xf32>
    %143 = arith.maximumf %141, %142 : vector<8x128xf32>
    %c0_71 = arith.constant 0 : index
    %c0_72 = arith.constant 0 : index
    %144 = vector.load %arg10[%c0_71, %c0_72] : memref<128x128xf32, #tpu.memory_space<vmem>>, vector<128x128xf32>
    %cst_73 = arith.constant dense<0.000000e+00> : vector<8x128xf32>
    %145 = tpu.matmul %143, %144, %cst_73 {dimension_numbers = #tpu.dot_dimension_numbers<[1], [0], [0], [1], [0, 0, 1, 1], [], []>} : vector<8x128xf32>, vector<128x128xf32>, vector<8x128xf32> -> vector<8x128xf32>
    %c0_74 = arith.constant 0 : index
    %c0_75 = arith.constant 0 : index
    %146 = vector.load %arg11[%c0_74, %c0_75] : memref<1x128xf32, #tpu.memory_space<vmem>>, vector<1x128xf32>
    %147 = vector.broadcast %146 : vector<1x128xf32> to vector<8x128xf32>
    %148 = arith.addf %145, %147 : vector<8x128xf32>
    %c0_76 = arith.constant 0 : index
    %c0_77 = arith.constant 0 : index
    %149 = vector.load %arg13[%c0_76, %c0_77] : memref<8x128xf32, #tpu.memory_space<vmem>>, vector<8x128xf32>
    tpu.vector_store %arg13[%c0_76, %c0_77], %148 {strides = array<i32>} : memref<8x128xf32, #tpu.memory_space<vmem>>, vector<8x128xf32>,
    return
  }
  func.func @transform_0(%arg0: i32) -> (i32, i32) {
    %c0_i32 = arith.constant 0 : i32
    %c0_i32_0 = arith.constant 0 : i32
    return %arg0, %c0_i32 : i32, i32
  }
  func.func @transform_1(%arg0: i32) -> (i32, i32) {
    %c0_i32 = arith.constant 0 : i32
    %c0_i32_0 = arith.constant 0 : i32
    %c0_i32_1 = arith.constant 0 : i32
    return %c0_i32, %c0_i32_0 : i32, i32
  }
  func.func @transform_2(%arg0: i32) -> (i32, i32) {
    %c0_i32 = arith.constant 0 : i32
    %c0_i32_0 = arith.constant 0 : i32
    %c0_i32_1 = arith.constant 0 : i32
    return %c0_i32, %c0_i32_0 : i32, i32
  }
  func.func @transform_3(%arg0: i32) -> (i32, i32) {
    %c0_i32 = arith.constant 0 : i32
    %c0_i32_0 = arith.constant 0 : i32
    %c0_i32_1 = arith.constant 0 : i32
    return %c0_i32, %c0_i32_0 : i32, i32
  }
  func.func @transform_4(%arg0: i32) -> (i32, i32) {
    %c0_i32 = arith.constant 0 : i32
    %c0_i32_0 = arith.constant 0 : i32
    %c0_i32_1 = arith.constant 0 : i32
    return %c0_i32, %c0_i32_0 : i32, i32
  }
  func.func @transform_5(%arg0: i32) -> (i32, i32) {
    %c0_i32 = arith.constant 0 : i32
    %c0_i32_0 = arith.constant 0 : i32
    %c0_i32_1 = arith.constant 0 : i32
    return %c0_i32, %c0_i32_0 : i32, i32
  }
  func.func @transform_6(%arg0: i32) -> (i32, i32) {
    %c0_i32 = arith.constant 0 : i32
    %c0_i32_0 = arith.constant 0 : i32
    %c0_i32_1 = arith.constant 0 : i32
    return %c0_i32, %c0_i32_0 : i32, i32
  }
  func.func @transform_7(%arg0: i32) -> (i32, i32) {
    %c0_i32 = arith.constant 0 : i32
    %c0_i32_0 = arith.constant 0 : i32
    %c0_i32_1 = arith.constant 0 : i32
    return %c0_i32, %c0_i32_0 : i32, i32
  }
  func.func @transform_8(%arg0: i32) -> (i32, i32) {
    %c0_i32 = arith.constant 0 : i32
    %c0_i32_0 = arith.constant 0 : i32
    %c0_i32_1 = arith.constant 0 : i32
    return %c0_i32, %c0_i32_0 : i32, i32
  }
  func.func @transform_9(%arg0: i32) -> (i32, i32) {
    %c0_i32 = arith.constant 0 : i32
    %c0_i32_0 = arith.constant 0 : i32
    %c0_i32_1 = arith.constant 0 : i32
    return %c0_i32, %c0_i32_0 : i32, i32
  }
  func.func @transform_10(%arg0: i32) -> (i32, i32) {
    %c0_i32 = arith.constant 0 : i32
    %c0_i32_0 = arith.constant 0 : i32
    %c0_i32_1 = arith.constant 0 : i32
    return %c0_i32, %c0_i32_0 : i32, i32
  }
  func.func @transform_11(%arg0: i32) -> (i32, i32) {
    %c0_i32 = arith.constant 0 : i32
    %c0_i32_0 = arith.constant 0 : i32
    return %arg0, %c0_i32 : i32, i32
  }
  func.func @transform_12(%arg0: i32) -> (i32, i32) {
    %c0_i32 = arith.constant 0 : i32
    %c0_i32_0 = arith.constant 0 : i32
    return %arg0, %c0_i32 : i32, i32
  }
}

</mosaic_0001>

<bundles_post_ra>
// kernel: tpu_custom_call.1
= control target key start
LH: loop header
LB: loop body
LE: loop exit
PB: predicated region body
PF: predicated region fallthrough
CT: control target
= control target key end

     0   :  { %s3351_s0 = inlined_call_operand.vmem [shape: f32[256,8], index: 0, kind: input, shape index: {}]   ;;  %s3352_s1 = inlined_call_operand.vmem [shape: f32[24,32], index: 1, kind: input, shape index: {}]   ;;  %s3353_s2 = inlined_call_operand.vmem [shape: f32[1,32], index: 2, kind: input, shape index: {}]   ;;  %s3354_s3 = inlined_call_operand.vmem [shape: f32[96,64], index: 3, kind: input, shape index: {}]   ;;  %s3355_s4 = inlined_call_operand.vmem [shape: f32[1,64], index: 4, kind: input, shape index: {}]   ;;  %s3356_s5 = inlined_call_operand.vmem [shape: f32[192,128], index: 5, kind: input, shape index: {}]   ;;  %s3357_s6 = inlined_call_operand.vmem [shape: f32[1,128], index: 6, kind: input, shape index: {}]   ;;  %s3358_s7 = inlined_call_operand.vmem [shape: f32[128,128], index: 7, kind: input, shape index: {}]   ;;  %s3359_s8 = inlined_call_operand.vmem [shape: f32[1,128], index: 8, kind: input, shape index: {}]   ;;  %s3360_s9 = inlined_call_operand.hbm [shape: f32[128,128], index: 9, kind: input, shape index: {}]   ;;  %s3361_s10 = inlined_call_operand.vmem [shape: f32[1,128], index: 10, kind: input, shape index: {}]   ;;  %s3362_s11 = inlined_call_operand.hbm [shape: f32[16,128], index: 11, kind: output, shape index: {0}]   ;;  %s3363_s12 = inlined_call_operand.hbm [shape: f32[16,128], index: 12, kind: output, shape index: {1}]  }
   0x1   :  { %3367 = sst [smem:[#allocation14_spill]] %s3351_s0 }
   0x2   :  { %3368 = sst [smem:[#allocation15_spill]] %s3352_s1 }
   0x3   :  { %3369 = sst [smem:[#allocation16_spill]] %s3353_s2 }
   0x4   :  { %3370 = sst [smem:[#allocation17_spill]] %s3354_s3 }
   0x5   :  { %3371 = sst [smem:[#allocation18_spill]] %s3355_s4 }
   0x6   :  { %3372 = sst [smem:[#allocation19_spill]] %s3356_s5 }
   0x7   :  { %18 = vsyncpa [#allocation6], 0 }
   0x8   :  { %19 = vsyncpa [#allocation7], 0 }
   0x9   :  { %21 = vsyncpa [#allocation7 + $0x1], 0 }
   0xa   :  { %22 = vsyncpa [#allocation10], 0 }
   0xb   :  { %24 = vsyncpa [#allocation10 + $0x1], 0  ;;  %s2379_s21 = smov 0   ;;  %s2381_s22 = smov 0  }
   0xc   :  { %s2383_s23 = smov 0   ;;  %s2385_s24 = smov 0  }
   0xd LB: > { %s2400_s25 = sadd.s32 4294967295, %s2305_s24   ;;  %s2061_s26 = sadd.s32 4294967294, %s2305_s24   ;;  %s2305_s24 = sphi %s2385_s24, %s3424_s24   ;;  %s2301_s23 = sphi %s2383_s23, %s3423_s23   ;;  %s2297_s22 = sphi %s2381_s22, %s3422_s22   ;;  %s2293_s21 = sphi %s2379_s21, %s3421_s21  }
   0xe   : > { %s2404_s27 = sadd.s32 1, %s2305_s24   ;;  %s273_s28 = sadd.s32 1, %s2301_s23 }
   0xf   : > { %s270_s29 = ssub.s32 %s2305_s24, %s2404_s27  ;;  %p283_p0 = scmp.ne.s32.totalorder %s2301_s23, %s2297_s22 }
  0x10   : > { %p271_p1 = scmp.eq.s32.totalorder %s270_s29, 0  ;;  %p284_p2 = scmp.eq.s32.totalorder %s2400_s25, 1 }
  0x11   : > { %p289_p3 = scmp.ne.s32.totalorder %s2297_s22, %s2293_s21  ;;  %p290_p4 = scmp.eq.s32.totalorder %s2061_s26, 1 }
  0x12   : > { %s2415_s30 = scalar_select %p271_p1, %s2301_s23, %s273_s28  }
  0x13   : > { %p2417_p5 = por %p284_p2, %p283_p0  ;;  %p2421_p6 = por %p290_p4, %p289_p3 }
  0x14   : > { %p2062_p7 = scmp.ge.s32.totalorder %s2305_s24, 1  ;;  %p323_p8 = scmp.lt.s32.totalorder %s2305_s24, 3 }
  0x15   : > { %p2130_p9 = scmp.eq.s32.totalorder %s2400_s25, 0  ;;  %s358_s17 = sshll.u32 %s3360_s9, 4  ;;  %s359_s17 = int_to_ptr.hbm [resolvable:$true] %s358_s17 }
  0x16   : > { %p324_p10 = pnand %p2062_p7, %p323_p8  ;;  %s2307_s18 = smov [#allocation5]  }
  0x17   : > { %s360_s19 = sshll.u32 %s2307_s18, 4  ;;  %s2308_s20 = smov 128   ;;  %s361_s19 = int_to_ptr.vmem [resolvable:$true] %s360_s19 }
  0x18   : > { %p2119_p11 = pneg %p324_p10  ;;  %s2309_s26 = smov 8  }
  0x19   : > { %388 = sbr.rel (%p324_p10) target bundleno = 1210 (0x4ba), region = 64 }
  0x1a   : > { %p2120_p12 = pnand %p2130_p9, %p2119_p11 }
  0x1c   : > { %2122 = dma.hbm_to_vmem [thread:$0]  (!%p2120_p12), %s359_s17, 2048, %s361_s19, [#allocation6], %s2308_s20, %s2308_s20, %s2309_s26  }
  0x1e   : > { %2280 = dma.done.wait (%p2130_p9), [#allocation6], 2048  }
  0x1f   : > { %2282 = vsyncadd (%p2130_p9), [#allocation6], 4294965248  ;;  %s2069_s28 = sshll.u32 %s2400_s25, 4  ;;  %v458_v0 = vlaneseq  ;;  %s3375_s0 = sld [smem:[#allocation14_spill]]  ;;  %vm989_vm11 = vcmask 64512   ;;  %vm1006_vm12 = vcmask 130048  }
  0x20   : > { %p437_p13 = scmp.lt.s32.totalorder %s2069_s28, 31  ;;  %s2310_s18 = smov 8   ;;  %vm1030_vm13 = vcmask 195584  }
  0x21   : > { %v2438_v1 = vshrl.u32 %v458_v0, 7  ;;  %s2311_s19 = smov 16   ;;  %s3376_s1 = sld [smem:[#allocation15_spill]] }
  0x22   : > { %s3426_s28 = smov (!%p437_p13, %s2069_s28), 31  ;;  %s3379_s2 = sld [smem:[#allocation16_spill]] }
  0x23   : > { %v2441_v2 = vadd.s32 8, %v2438_v1  ;;  %s2070_s29 = sshll.u32 %s3426_s28, 3  ;;  %vm796_vm0 = vcmp.lt.s32.totalorder %v2438_v1, 7  ;;  %v2472_v11 = vadd.s32 24, %v2438_v1  ;;  %v2494_v21 = vadd.s32 40, %v2438_v1  ;;  %s3364_s20 = smov 64  }
  0x24   : > { %v2523_v33 = vadd.s32 56, %v2438_v1  ;;  %v470_v47 = vadd.s32 88, %v2438_v1  ;;  %v468_v53 = vadd.s32 72, %v2438_v1  ;;  %v474_v61 = vadd.s32 120, %v2438_v1  ;;  %s3390_s3 = sld [smem:[#allocation17_spill]]  ;;  %s3407_s16 = smov 64  }
  0x25   : > { %s2446_s17 = scalar_lea.vmem %s3375_s0, %s2070_s29  ;;  %v486_v3 = vand.u32 15, %v2441_v2  ;;  %v500_v17 = vand.u32 15, %v2472_v11  ;;  %v514_v25 = vand.u32 15, %v2494_v21  ;;  %vm699_vm9 = vcmp.lt.s32.totalorder %v2438_v1, 1  ;;  %s3405_s4 = sld [smem:[#allocation18_spill]] }
  0x26   : > { %v2450_v4 = vld [vmem:[%s2446_s17 + $0x8] sm:$0xff]  ;;  %v2453_v5 = vld [vmem:[%s2446_s17] sm:$0xff]  ;;  %v2456_v6 = vld [vmem:[%s2446_s17 + $0x10] sm:$0xff]  ;;  %v528_v36 = vand.u32 15, %v2523_v33  ;;  %v556_v50 = vand.u32 15, %v470_v47  ;;  %v542_v57 = vand.u32 15, %v468_v53 }
  0x27   : > { %879 = vrot.lane.b32.xlu1 %v2450_v4, %s2310_s18  ;;  %v781_v7 = vrot.slane %v2450_v4, 1  ;;  %877 = vrot.lane.b32.xlu0 %v2453_v5, %s2310_s18  ;;  %v780_v8 = vrot.slane %v2453_v5, 1  ;;  %v782_v9 = vrot.slane %v2456_v6, 1  ;;  %v2467_v10 = vld [vmem:[%s2446_s17 + $0x18] sm:$0xff]  ;;  %vm765_vm1 = vcmp.eq.s32.totalorder %v486_v3, 15  ;;  %v2477_v13 = vld [vmem:[%s2446_s17 + $0x20] sm:$0xff] }
  0x28   : > { %881 = vrot.lane.b32.xlu2 %v2456_v6, %s2310_s18  ;;  %v783_v14 = vrot.slane %v2467_v10, 1  ;;  %v784_v18 = vrot.slane %v2477_v13, 1  ;;  %vm767_vm2 = vcmp.eq.s32.totalorder %v500_v17, 15  ;;  %v2497_v23 = vld [vmem:[%s2446_s17 + $0x28] sm:$0xff]  ;;  %v2500_v24 = vld [vmem:[%s2446_s17 + $0x30] sm:$0xff]  ;;  %vm769_vm3 = vcmp.eq.s32.totalorder %v514_v25, 15 }
  0x29   : > { %v810_v12 = vsel %vm796_vm0, %v781_v7, %v782_v9  ;;  %v811_v16 = vsel %vm796_vm0, %v780_v8, %v781_v7  ;;  %v785_v26 = vrot.slane %v2497_v23, 1  ;;  %v786_v27 = vrot.slane %v2500_v24, 1  ;;  %v2515_v30 = vld [vmem:[%s2446_s17 + $0x38] sm:$0xff]  ;;  %v2526_v34 = vld [vmem:[%s2446_s17 + $0x40] sm:$0xff]  ;;  %v2543_v40 = vld [vmem:[%s2446_s17 + $0x50] sm:$0xff]  ;;  %s3406_s5 = sld [smem:[#allocation19_spill]] }
  0x2a   : > { %v846_v15 = vsel %vm765_vm1, 0.0, %v810_v12  ;;  %v809_v19 = vsel %vm796_vm0, %v782_v9, %v783_v14  ;;  %v808_v20 = vsel %vm796_vm0, %v783_v14, %v784_v18  ;;  %v787_v32 = vrot.slane %v2515_v30, 1  ;;  %v2536_v38 = vld [vmem:[%s2446_s17 + $0x58] sm:$0xff]  ;;  %v2548_v44 = vld [vmem:[%s2446_s17 + $0x48] sm:$0xff]  ;;  %v2559_v48 = vld [vmem:[%s2446_s17 + $0x60] sm:$0xff]  ;;  %s2101_s28 = sshll.u32 %s2400_s25, 3 }
  0x2b   : > { %v848_v22 = vsel %vm767_vm2, 0.0, %v808_v20  ;;  %v806_v28 = vsel %vm796_vm0, %v785_v26, %v786_v27  ;;  %v807_v29 = vsel %vm796_vm0, %v784_v18, %v785_v26  ;;  %v788_v37 = vrot.slane %v2526_v34, 1  ;;  %v2573_v55 = vld [vmem:[%s2446_s17 + $0x70] sm:$0xff]  ;;  %v2576_v56 = vld [vmem:[%s2446_s17 + $0x78] sm:$0xff]  ;;  %v2591_v0 = vld [vmem:[%s2446_s17 + $0x68] sm:$0xff]  ;;  %s2227_s25 = scalar_lea.hbm %s3362_s11, 16 }
  0x2c   : > { %v850_v31 = vsel %vm769_vm3, 0.0, %v806_v28  ;;  %v805_v35 = vsel %vm796_vm0, %v786_v27, %v787_v32  ;;  %vm771_vm4 = vcmp.eq.s32.totalorder %v528_v36, 15  ;;  %v790_v41 = vrot.slane %v2543_v40, 1 }
  0x2d   : > { %v804_v39 = vsel %vm796_vm0, %v787_v32, %v788_v37  ;;  %v791_v42 = vrot.slane %v2536_v38, 1  ;;  %v789_v46 = vrot.slane %v2548_v44, 1  ;;  %v792_v51 = vrot.slane %v2559_v48, 1 }
  0x2e   : > { %v852_v43 = vsel %vm771_vm4, 0.0, %v804_v39  ;;  %vm775_vm5 = vcmp.eq.s32.totalorder %v556_v50, 15  ;;  %v794_v58 = vrot.slane %v2573_v55, 1  ;;  %v795_v59 = vrot.slane %v2576_v56, 1 }
  0x2f   : > { %943 = vrot.lane.b32.xlu1 %v846_v15, %s2311_s19  ;;  %941 = vrot.lane.b32.xlu0 %v811_v16, %s2311_s19  ;;  %v801_v45 = vsel %vm796_vm0, %v790_v41, %v791_v42  ;;  %v803_v49 = vsel %vm796_vm0, %v788_v37, %v789_v46  ;;  %v800_v52 = vsel %vm796_vm0, %v791_v42, %v792_v51  ;;  %vm773_vm6 = vcmp.eq.s32.totalorder %v542_v57, 15 }
  0x30   : > { %945 = vrot.lane.b32.xlu2 %v809_v19, %s2311_s19  ;;  %v856_v54 = vsel %vm775_vm5, 0.0, %v800_v52  ;;  %v802_v60 = vsel %vm796_vm0, %v789_v46, %v790_v41  ;;  %v797_v62 = vsel %vm796_vm0, %v794_v58, %v795_v59  ;;  %v584_v3 = vand.u32 15, %v474_v61 }
  0x31   : > { %v854_v63 = vsel %vm773_vm6, 0.0, %v802_v60  ;;  %v793_v7 = vrot.slane %v2591_v0, 1  ;;  %v472_v9 = vadd.s32 104, %v2438_v1  ;;  %v812_v12 = vsel %vm796_vm0, %v795_v59, %v780_v8 }
  0x32   : > { %vm779_vm7 = vcmp.eq.s32.totalorder %v584_v3, 15  ;;  %v684_v19 = vrot.slane %v2450_v4, 7  ;;  %v683_v8 = vrot.slane %v2453_v5, 7  ;;  %v1024_v4 = vld [vmem:[%s3376_s1 + $0x8] sm:$0xff]  ;;  %v1023_v5 = vld [vmem:[%s3376_s1] sm:$0xff]  ;;  %v479_v27 = vand.u32 15, %v2438_v1 }
  0x33   : > { %v799_v14 = vsel %vm796_vm0, %v792_v51, %v793_v7  ;;  %v570_v15 = vand.u32 15, %v472_v9  ;;  %v860_v16 = vsel %vm779_vm7, 0.0, %v812_v12  ;;  %v798_v17 = vsel %vm796_vm0, %v793_v7, %v794_v58 }
  0x34   : > { %v714_v20 = vsel %vm699_vm9, %v683_v8, %v684_v19  ;;  %v698_v28 = vrot.slane %v2576_v56, 7  ;;  %vm667_vm10 = vcmp.eq.s32.totalorder %v479_v27, 0  ;;  %v2636_v39 = vadd.s32 16, %v2438_v1 }
  0x35   : > { %vm777_vm8 = vcmp.eq.s32.totalorder %v570_v15, 15  ;;  %v685_v47 = vrot.slane %v2456_v6, 7  ;;  %v686_v59 = vrot.slane %v2467_v10, 7  ;;  %v2652_v6 = vadd.s32 32, %v2438_v1 }
  0x36   : > { %v858_v18 = vsel %vm777_vm8, 0.0, %v798_v17  ;;  %v493_v46 = vand.u32 15, %v2636_v39  ;;  %v469_v3 = vadd.s32 80, %v2438_v1  ;;  %v687_v9 = vrot.slane %v2477_v13, 7 }
  0x37   : > { %947 = vrot.lane.b32.xlu1 %v848_v22, %s2311_s19  ;;  %883 = vrot.lane.b32.xlu0 %v2467_v10, %s2310_s18  ;;  %v1025_v22 = vld [vmem:[%s3376_s1 + $0x10] sm:$0xff]  ;;  %v713_v50 = vsel %vm699_vm9, %v684_v19, %v685_v47  ;;  %v507_v7 = vand.u32 15, %v2652_v6  ;;  %v693_v12 = vrot.slane %v2543_v40, 7  ;;  %v692_v15 = vrot.slane %v2548_v44, 7 }
  0x38   : > { %885 = vrot.lane.b32.xlu2 %v2477_v13, %s2310_s18  ;;  %1092 = vmatpush.msra.mxu0 %v1025_v22  ;;  %vm669_vm14 = vcmp.eq.s32.totalorder %v493_v46, 0  ;;  %v711_v17 = vsel %vm699_vm9, %v686_v59, %v687_v9  ;;  %vm1160_vm6 = vcmask 261120  }
  0x39   : > { %2105 = vmatpush.msra.mxu2 %v1025_v22  ;;  %2106 = vmatpush.msra.mxu3 %v1025_v22  ;;  %vm671_vm15 = vcmp.eq.s32.totalorder %v507_v7, 0  ;;  %v705_v13 = vsel %vm699_vm9, %v692_v15, %v693_v12 }
  0x3a   : > { %1093 = vmatpush.msra.mxu0 %v1024_v4 }
  0x3b   : > { %2107 = vmatpush.msra.mxu2 %v1024_v4  ;;  %2108 = vmatpush.msra.mxu3 %v1024_v4  ;;  %v688_v4 = vrot.slane %v2497_v23, 7 }
  0x3c   : > { %1094 = vmatpush.msra.mxu0 %v1023_v5 }
  0x3d   : > { %2109 = vmatpush.msra.mxu2 %v1023_v5  ;;  %2110 = vmatpush.msra.mxu3 %v1023_v5  ;;  %v2675_v5 = vadd.s32 48, %v2438_v1 }
  0x3f   : > { %887 = vrot.lane.b32.xlu1 %v2497_v23, %s2310_s18  ;;  %949 = vrot.lane.b32.xlu0 %v807_v29, %s2311_s19  ;;  %v521_v23 = vand.u32 15, %v2675_v5 }
  0x40   : > { %951 = vrot.lane.b32.xlu2 %v850_v31, %s2311_s19 }
  0x41   : > { %vm673_vm2 = vcmp.eq.s32.totalorder %v521_v23, 0 }
  0x47   : > { %953 = vrot.lane.b32.xlu1 %v805_v35, %s2311_s19  ;;  %889 = vrot.lane.b32.xlu0 %v2500_v24, %s2310_s18  ;;  %v715_v35 = vsel %vm699_vm9, %v698_v28, %v683_v8 }
  0x48   : > { %891 = vrot.lane.b32.xlu2 %v2515_v30, %s2310_s18  ;;  %v748_v36 = vsel %vm667_vm10, 0.0, %v715_v35 }
  0x4f   : > { %897 = vrot.lane.b32.xlu1 %v2543_v40, %s2310_s18  ;;  %955 = vrot.lane.b32.xlu0 %v852_v43, %s2311_s19 }
  0x50   : > { %961 = vrot.lane.b32.xlu2 %v801_v45, %s2311_s19 }
  0x57   : > { %957 = vrot.lane.b32.xlu1 %v803_v49, %s2311_s19  ;;  %893 = vrot.lane.b32.xlu0 %v2526_v34, %s2310_s18 }
  0x58   : > { %899 = vrot.lane.b32.xlu2 %v2536_v38, %s2310_s18 }
  0x5f   : > { %895 = vrot.lane.b32.xlu1 %v2548_v44, %s2310_s18  ;;  %963 = vrot.lane.b32.xlu0 %v856_v54, %s2311_s19  ;;  %v750_v54 = vsel %vm669_vm14, 0.0, %v713_v50 }
  0x60   : > { %905 = vrot.lane.b32.xlu2 %v2573_v55, %s2310_s18 }
  0x67   : > { %969 = vrot.lane.b32.xlu1 %v797_v62, %s2311_s19  ;;  %959 = vrot.lane.b32.xlu0 %v854_v63, %s2311_s19  ;;  %v712_v63 = vsel %vm699_vm9, %v685_v47, %v686_v59  ;;  %v473_v47 = vadd.s32 112, %v2438_v1  ;;  %v690_v59 = vrot.slane %v2515_v30, 7 }
  0x68   : > { %901 = vrot.lane.b32.xlu2 %v2559_v48, %s2310_s18 }
  0x6f   : > { %907 = vrot.lane.b32.xlu1 %v2576_v56, %s2310_s18  ;;  %965 = vrot.lane.b32.xlu0 %v799_v14, %s2311_s19  ;;  %v549_v14 = vand.u32 15, %v469_v3 }
  0x70   : > { %971 = vrot.lane.b32.xlu2 %v860_v16, %s2311_s19 }
  0x71   : > { %vm677_vm1 = vcmp.eq.s32.totalorder %v549_v14, 0  ;;  %v695_v14 = vrot.slane %v2559_v48, 7 }
  0x72   : > { %v758_v22 = vsel %vm677_vm1, 0.0, %v705_v13 }
  0x77   : > { %903 = vrot.lane.b32.xlu0 %v2591_v0, %s2310_s18  ;;  %967 = vrot.lane.b32.xlu1 %v858_v18, %s2311_s19  ;;  %s2312_s19 = smov 32  }
  0x82   : > { %v882_v25 = vpop.permute.xlu2 %881 }
  0x83   : > { %v992_v58 = vsel %vm989_vm11, %v750_v54, %v882_v25 }
  0x8a   : > { %v946_v26 = vpop.permute.xlu2 %945 }
  0x8b   : > { %v1009_v62 = vsel %vm1006_vm12, %v992_v58, %v946_v26 }
  0x92   : > { %v886_v32 = vpop.permute.xlu2 %885 }
  0x99   : > { %v880_v29 = vpop.permute.xlu1 %879  ;;  %v878_v31 = vpop.permute.xlu0 %877 }
  0x9a   : > { %v990_v37 = vsel %vm989_vm11, %v748_v36, %v878_v31  ;;  %v952_v45 = vpop.permute.xlu2 %951  ;;  %v991_v49 = vsel %vm989_vm11, %v714_v20, %v880_v29  ;;  %v752_v20 = vsel %vm671_vm15, 0.0, %v711_v17  ;;  %v689_v36 = vrot.slane %v2500_v24, 7 }
  0x9b   : > { %v994_v40 = vsel %vm989_vm11, %v752_v20, %v886_v32  ;;  %v710_v32 = vsel %vm699_vm9, %v687_v9, %v688_v4 }
  0x9c   : > { %v708_v30 = vsel %vm699_vm9, %v689_v36, %v690_v59 }
  0xa1   : > { %v944_v41 = vpop.permute.xlu1 %943  ;;  %v942_v42 = vpop.permute.xlu0 %941 }
  0xa2   : > { %v1007_v43 = vsel %vm1006_vm12, %v990_v37, %v942_v42  ;;  %v1008_v53 = vsel %vm1006_vm12, %v991_v49, %v944_v41  ;;  %v2647_v57 = vpop.permute.xlu2 %891  ;;  %v694_v41 = vrot.slane %v2536_v38, 7  ;;  %v709_v42 = vsel %vm699_vm9, %v688_v4, %v689_v36 }
  0xa3   : > { %2071 = vmatmul.msk.f32.vlgmr.msra.gmra.mxu0 %vm1030_vm13, %v1007_v43  ;;  %v754_v50 = vsel %vm673_vm2, 0.0, %v709_v42  ;;  %v696_v38 = vrot.slane %v2591_v0, 7  ;;  %v471_v0 = vadd.s32 96, %v2438_v1  ;;  %v997_v17 = vsel %vm989_vm11, %v708_v30, %v2647_v57 }
  0xa4   : > { %v704_v24 = vsel %vm699_vm9, %v693_v12, %v694_v41  ;;  %v703_v13 = vsel %vm699_vm9, %v694_v41, %v695_v14 }
  0xa5   : > { %v563_v12 = vand.u32 15, %v471_v0  ;;  %v702_v36 = vsel %vm699_vm9, %v695_v14, %v696_v38  ;;  %v1220_v0 = vand.u32 7, %v2438_v1 }
  0xa7   : > { %vm679_vm5 = vcmp.eq.s32.totalorder %v563_v12, 0  ;;  %vm2777_vm7 = vcmp.eq.s32.totalorder %v1220_v0, 7  ;;  %vm2886_vm15 = vcmp.eq.s32.totalorder %v1220_v0, 0 }
  0xa9   : > { %v948_v51 = vpop.permute.xlu1 %947  ;;  %v884_v52 = vpop.permute.xlu0 %883 }
  0xaa   : > { %v993_v10 = vsel %vm989_vm11, %v712_v63, %v884_v52  ;;  %v962_v16 = vpop.permute.xlu2 %961  ;;  %v577_v52 = vand.u32 15, %v473_v47 }
  0xab   : > { %2072 = vmatmul.msk.f32.gmra.mxu0 %vm1030_vm13, %v1008_v53  ;;  %v1010_v8 = vsel %vm1006_vm12, %v993_v10, %v948_v51  ;;  %v697_v53 = vrot.slane %v2573_v55, 7  ;;  %v691_v10 = vrot.slane %v2526_v34, 7 }
  0xac   : > { %vm2701_vm3 = vcmp.eq.s32.totalorder %v577_v52, 0 }
  0xad   : > { %v701_v63 = vsel %vm699_vm9, %v696_v38, %v697_v53  ;;  %v706_v56 = vsel %vm699_vm9, %v691_v10, %v692_v15  ;;  %v2757_v15 = vld [vmem:[%s3379_s2] ss:$0 sm:$0xff] }
  0xae   : > { %v762_v7 = vsel %vm2701_vm3, 0.0, %v701_v63 }
  0xb1   : > { %v888_v60 = vpop.permute.xlu1 %887  ;;  %v950_v61 = vpop.permute.xlu0 %949 }
  0xb2   : > { %v1011_v29 = vsel %vm1006_vm12, %v994_v40, %v950_v61  ;;  %v900_v31 = vpop.permute.xlu2 %899  ;;  %v995_v37 = vsel %vm989_vm11, %v710_v32, %v888_v60  ;;  %v760_v40 = vsel %vm679_vm5, 0.0, %v703_v13 }
  0xb3   : > { %2073 = vmatmul.msk.f32.gmra.mxu0 %vm1030_vm13, %v1009_v62  ;;  %v1012_v49 = vsel %vm1006_vm12, %v995_v37, %v952_v45  ;;  %v1001_v58 = vsel %vm989_vm11, %v704_v24, %v900_v31  ;;  %v467_v45 = vadd.s32 64, %v2438_v1 }
  0xb5   : > { %v535_v9 = vand.u32 15, %v467_v45 }
  0xb7   : > { %vm675_vm4 = vcmp.eq.s32.totalorder %v535_v9, 0 }
  0xb9   : > { %v954_v18 = vpop.permute.xlu1 %953  ;;  %v890_v19 = vpop.permute.xlu0 %889 }
  0xba   : > { %v906_v51 = vpop.permute.xlu2 %905  ;;  %v996_v54 = vsel %vm989_vm11, %v754_v50, %v890_v19  ;;  %v707_v19 = vsel %vm699_vm9, %v690_v59, %v691_v10 }
  0xbb   : > { %2074 = vmatmul.msk.f32.gmra.mxu0 %vm1030_vm13, %v1010_v8  ;;  %v1013_v55 = vsel %vm1006_vm12, %v996_v54, %v954_v18  ;;  %v1004_v18 = vsel %vm989_vm11, %v762_v7, %v906_v51  ;;  %v756_v57 = vsel %vm675_vm4, 0.0, %v707_v19 }
  0xc1   : > { %v898_v25 = vpop.permute.xlu1 %897  ;;  %v956_v26 = vpop.permute.xlu0 %955 }
  0xc2   : > { %v1000_v27 = vsel %vm989_vm11, %v758_v22, %v898_v25  ;;  %v1014_v34 = vsel %vm1006_vm12, %v997_v17, %v956_v26  ;;  %v700_v25 = vsel %vm699_vm9, %v697_v53, %v698_v28 }
  0xc3   : > { %2075 = vmatmul.msk.f32.gmra.mxu0 %vm1030_vm13, %v1011_v29  ;;  %v1017_v35 = vsel %vm1006_vm12, %v1000_v27, %v962_v16  ;;  %v902_v16 = vpop.permute.xlu2 %901 }
  0xc4   : > { %2081 = vmatmul.msk.f32.vlgmr.msra.gmra.mxu2 %vm1030_vm13, %v1017_v35  ;;  %v1002_v4 = vsel %vm989_vm11, %v760_v40, %v902_v16 }
  0xc9   : > { %v958_v43 = vpop.permute.xlu1 %957  ;;  %v894_v46 = vpop.permute.xlu0 %893 }
  0xca   : > { %v998_v22 = vsel %vm989_vm11, %v756_v57, %v894_v46 }
  0xcb   : > { %2076 = vmatmul.msk.f32.gmra.mxu0 %vm1030_vm13, %v1012_v49  ;;  %v972_v27 = vpop.permute.xlu2 %971  ;;  %v1015_v35 = vsel %vm1006_vm12, %v998_v22, %v958_v43 }
  0xd1   : > { %v896_v60 = vpop.permute.xlu1 %895  ;;  %v964_v61 = vpop.permute.xlu0 %963 }
  0xd2   : > { %v1018_v3 = vsel %vm1006_vm12, %v1001_v58, %v964_v61  ;;  %v999_v28 = vsel %vm989_vm11, %v706_v56, %v896_v60 }
  0xd3   : > { %2077 = vmatmul.msk.f32.gmra.mxu0 %vm1030_vm13, %v1013_v55  ;;  %2082 = vmatmul.msk.f32.gmra.mxu2 %vm1030_vm13, %v1018_v3  ;;  %v1227_v55 = vand.u32 7, %v2441_v2 }
  0xd5   : > { %vm2781_vm8 = vcmp.eq.s32.totalorder %v1227_v55, 0  ;;  %vm1361_vm10 = vcmp.eq.s32.totalorder %v1227_v55, 7 }
  0xd9   : > { %v970_v8 = vpop.permute.xlu1 %969  ;;  %v960_v20 = vpop.permute.xlu0 %959 }
  0xda   : > { %v1021_v48 = vsel %vm1006_vm12, %v1004_v18, %v970_v8  ;;  %v1016_v43 = vsel %vm1006_vm12, %v999_v28, %v960_v20 }
  0xdb   : > { %2078 = vmatmul.msk.f32.gmra.mxu0 %vm1030_vm13, %v1014_v34  ;;  %2085 = vmatmul.msk.f32.vlgmr.msra.gmra.mxu3 %vm1030_vm13, %v1021_v48 }
  0xe1   : > { %v908_v29 = vpop.permute.xlu1 %907  ;;  %v966_v26 = vpop.permute.xlu0 %965 }
  0xe2   : > { %v1005_v31 = vsel %vm989_vm11, %v700_v25, %v908_v29  ;;  %v1019_v32 = vsel %vm1006_vm12, %v1002_v4, %v966_v26 }
  0xe3   : > { %2079 = vmatmul.msk.f32.gmra.mxu0 %vm1030_vm13, %v1015_v35  ;;  %2083 = vmatmul.msk.f32.gmra.mxu2 %vm1030_vm13, %v1019_v32  ;;  %v1022_v23 = vsel %vm1006_vm12, %v1005_v31, %v972_v27  ;;  %v1234_v35 = vand.u32 7, %v2636_v39 }
  0xe4   : > { %2086 = vmatmul.msk.f32.gmra.mxu3 %vm1030_vm13, %v1022_v23 }
  0xe9   : > { %v904_v37 = vpop.permute.xlu0 %903  ;;  %v968_v41 = vpop.permute.xlu1 %967 }
  0xea   : > { %v1003_v42 = vsel %vm989_vm11, %v702_v36, %v904_v37  ;;  %vm2813_vm11 = vcmp.eq.s32.totalorder %v1234_v35, 0 }
  0xeb   : > { %2080 = vmatmul.msk.f32.gmra.mxu0 %vm1030_vm13, %v1016_v43  ;;  %v1020_v44 = vsel %vm1006_vm12, %v1003_v42, %v968_v41  ;;  %vm2837_vm12 = vcmp.eq.s32.totalorder %v1234_v35, 7  ;;  %v1500_v35 = vld [vmem:[%s3390_s3 + $0x58] sm:$0xff] }
  0xec   : > { %2084 = vmatmul.msk.f32.gmra.mxu2 %vm1030_vm13, %v1020_v44  ;;  %1534 = vmatpush.msra.mxu1 %v1500_v35 }
 0x120   : > { %v1096_v46 = vpop.f32.mrf.mxu0 }
 0x121   : > { %v1097_v47 = vadd.f32 %v2757_v15, %v1096_v46 }
 0x123   : > { %v1144_v49 = vmax.f32 %v1097_v47, 0.0 }
 0x125   : > { %1161 = vst.msk [vmem:[#allocation2] sm:$0xff] %vm1160_vm6, %v1144_v49 }
 0x128   : > { %v1099_v50 = vpop.f32.mrf.mxu0 }
 0x129   : > { %v1100_v24 = vadd.f32 %v2757_v15, %v1099_v50 }
 0x12b   : > { %v1145_v51 = vmax.f32 %v1100_v24, 0.0 }
 0x12d   : > { %1162 = vst.msk [vmem:[#allocation2 + $0x8] sm:$0xff] %vm1160_vm6, %v1145_v51 }
 0x130   : > { %v1102_v52 = vpop.f32.mrf.mxu0 }
 0x131   : > { %v1103_v38 = vadd.f32 %v2757_v15, %v1102_v52 }
 0x133   : > { %v1146_v53 = vmax.f32 %v1103_v38, 0.0 }
 0x134   : > { %v1177_v54 = vld [vmem:[#allocation2] ss:$2 sm:$0xff]  ;;  %v1193_v58 = vld [vmem:[#allocation2 + $0x1] ss:$2 sm:$0xff] }
 0x135   : > { %1163 = vst.msk [vmem:[#allocation2 + $0x10] sm:$0xff] %vm1160_vm6, %v1146_v53  ;;  %v2765_v59 = vmax.f32 %v1177_v54, %v1193_v58  ;;  %v1241_v58 = vand.u32 7, %v2472_v11 }
 0x137   : > { %1416 = vrot.lane.b32.xlu2 %v2765_v59, %s2312_s19  ;;  %v1320_v14 = vrot.slane %v2765_v59, 7  ;;  %v1368_v17 = vrot.slane %v2765_v59, 1  ;;  %vm2846_vm13 = vcmp.eq.s32.totalorder %v1241_v58, 0  ;;  %vm2894_vm1 = vcmp.eq.s32.totalorder %v1241_v58, 7  ;;  %v1492_v59 = vld [vmem:[%s3390_s3 + $0x18] sm:$0xff] }
 0x138   : > { %v1105_v45 = vpop.f32.mrf.mxu0 }
 0x139   : > { %v1106_v60 = vadd.f32 %v2757_v15, %v1105_v45 }
 0x13b   : > { %v1147_v61 = vmax.f32 %v1106_v60, 0.0 }
 0x13d   : > { %1164 = vst.msk [vmem:[#allocation2 + $0x18] sm:$0xff] %vm1160_vm6, %v1147_v61 }
 0x140   : > { %v1108_v62 = vpop.f32.mrf.mxu0 }
 0x141   : > { %v1109_v63 = vadd.f32 %v2757_v15, %v1108_v62 }
 0x143   : > { %v1148_v3 = vmax.f32 %v1109_v63, 0.0 }
 0x144   : > { %v1179_v30 = vld [vmem:[#allocation2 + $0x10] ss:$2 sm:$0xff]  ;;  %v1195_v7 = vld [vmem:[#allocation2 + $0x11] ss:$2 sm:$0xff] }
 0x145   : > { %1165 = vst.msk [vmem:[#allocation2 + $0x20] sm:$0xff] %vm1160_vm6, %v1148_v3  ;;  %v1209_v9 = vmax.f32 %v1179_v30, %v1195_v7 }
 0x147   : > { %1418 = vrot.lane.b32.xlu1 %v1209_v9, %s2312_s19  ;;  %v1321_v16 = vrot.slane %v1209_v9, 7  ;;  %v1369_v18 = vrot.slane %v1209_v9, 1  ;;  %v1126_v19 = vpop.f32.mrf.mxu2 }
 0x148   : > { %v1111_v8 = vpop.f32.mrf.mxu0  ;;  %v1127_v20 = vadd.f32 %v2757_v15, %v1126_v19 }
 0x149   : > { %v1112_v13 = vadd.f32 %v2757_v15, %v1111_v8  ;;  %v1382_v34 = vsel %vm796_vm0, %v1368_v17, %v1369_v18  ;;  %v2798_v48 = vsel %vm699_vm9, %v1320_v14, %v1321_v16 }
 0x14a   : > { %v1400_v57 = vsel %vm2777_vm7, 0.0, %v1382_v34  ;;  %v1154_v40 = vmax.f32 %v1127_v20, 0.0  ;;  %v1353_v22 = vsel %vm2781_vm8, 0.0, %v2798_v48 }
 0x14b   : > { %v1149_v4 = vmax.f32 %v1112_v13, 0.0  ;;  %1448 = vrot.lane.b32.xlu0 %v1400_v57, %s3364_s20 }
 0x14c   : > { %1171 = vst.msk [vmem:[#allocation2 + $0x50] sm:$0xff] %vm1160_vm6, %v1154_v40 }
 0x14d   : > { %1166 = vst.msk [vmem:[#allocation2 + $0x28] sm:$0xff] %vm1160_vm6, %v1149_v4 }
 0x150   : > { %v1114_v25 = vpop.f32.mrf.mxu0 }
 0x151   : > { %v1115_v27 = vadd.f32 %v2757_v15, %v1114_v25 }
 0x153   : > { %v1150_v29 = vmax.f32 %v1115_v27, 0.0 }
 0x154   : > { %v1181_v26 = vld [vmem:[#allocation2 + $0x20] ss:$2 sm:$0xff]  ;;  %v1197_v31 = vld [vmem:[#allocation2 + $0x21] ss:$2 sm:$0xff] }
 0x155   : > { %1167 = vst.msk [vmem:[#allocation2 + $0x30] sm:$0xff] %vm1160_vm6, %v1150_v29  ;;  %v1210_v32 = vmax.f32 %v1181_v26, %v1197_v31  ;;  %v1248_v31 = vand.u32 7, %v2652_v6  ;;  %v1498_v6 = vld [vmem:[%s3390_s3 + $0x48] sm:$0xff] }
 0x156   : > { %v1129_v23 = vpop.f32.mrf.mxu2 }
 0x157   : > { %v1130_v56 = vadd.f32 %v2757_v15, %v1129_v23  ;;  %v1322_v28 = vrot.slane %v1210_v32, 7  ;;  %1420 = vrot.lane.b32.xlu0 %v1210_v32, %s2312_s19  ;;  %v1370_v36 = vrot.slane %v1210_v32, 1  ;;  %v1499_v32 = vld [vmem:[%s3390_s3 + $0x50] sm:$0xff]  ;;  %vm2880_vm14 = vcmp.eq.s32.totalorder %v1248_v31, 7 }
 0x158   : > { %v1117_v37 = vpop.f32.mrf.mxu0  ;;  %1535 = vmatpush.msra.mxu1 %v1499_v32  ;;  %vm2904_vm2 = vcmp.eq.s32.totalorder %v1248_v31, 0 }
 0x159   : > { %v1155_v42 = vmax.f32 %v1130_v56, 0.0  ;;  %v1118_v43 = vadd.f32 %v2757_v15, %v1117_v37  ;;  %v1381_v44 = vsel %vm796_vm0, %v1369_v18, %v1370_v36  ;;  %v2822_v47 = vsel %vm699_vm9, %v1321_v16, %v1322_v28 }
 0x15a   : > { %v1401_v46 = vsel %vm1361_vm10, 0.0, %v1381_v44  ;;  %v1354_v50 = vsel %vm2813_vm11, 0.0, %v2822_v47  ;;  %v1255_v56 = vand.u32 7, %v2494_v21  ;;  %1536 = vmatpush.msra.mxu1 %v1498_v6 }
 0x15b   : > { %1172 = vst.msk [vmem:[#allocation2 + $0x58] sm:$0xff] %vm1160_vm6, %v1155_v42  ;;  %v1151_v49 = vmax.f32 %v1118_v43, 0.0  ;;  %1450 = vrot.lane.b32.xlu2 %v1401_v46, %s3364_s20 }
 0x15c   : > { %vm2908_vm3 = vcmp.eq.s32.totalorder %v1255_v56, 0  ;;  %vm1365_vm4 = vcmp.eq.s32.totalorder %v1255_v56, 7 }
 0x15d   : > { %1168 = vst.msk [vmem:[#allocation2 + $0x38] sm:$0xff] %vm1160_vm6, %v1151_v49  ;;  %v1497_v49 = vld [vmem:[%s3390_s3 + $0x40] sm:$0xff] }
 0x15e   : > { %v1138_v24 = vpop.f32.mrf.mxu3  ;;  %1537 = vmatpush.msra.mxu1 %v1497_v49 }
 0x15f   : > { %v1139_v51 = vadd.f32 %v2757_v15, %v1138_v24 }
 0x160   : > { %v1120_v52 = vpop.f32.mrf.mxu0 }
 0x161   : > { %v1158_v38 = vmax.f32 %v1139_v51, 0.0  ;;  %v1121_v53 = vadd.f32 %v2757_v15, %v1120_v52 }
 0x162   : > { %v1187_v27 = vld [vmem:[#allocation2 + $0x50] ss:$2 sm:$0xff]  ;;  %v1203_v29 = vld [vmem:[#allocation2 + $0x51] ss:$2 sm:$0xff] }
 0x163   : > { %1175 = vst.msk [vmem:[#allocation2 + $0x70] sm:$0xff] %vm1160_vm6, %v1158_v38  ;;  %v1152_v54 = vmax.f32 %v1121_v53, 0.0  ;;  %v1213_v23 = vmax.f32 %v1187_v27, %v1203_v29 }
 0x164   : > { %v1183_v45 = vld [vmem:[#allocation2 + $0x30] ss:$2 sm:$0xff]  ;;  %v1199_v60 = vld [vmem:[#allocation2 + $0x31] ss:$2 sm:$0xff] }
 0x165   : > { %1169 = vst.msk [vmem:[#allocation2 + $0x40] sm:$0xff] %vm1160_vm6, %v1152_v54  ;;  %v2835_v61 = vmax.f32 %v1183_v45, %v1199_v60  ;;  %v1373_v52 = vrot.slane %v1213_v23, 1  ;;  %v1325_v53 = vrot.slane %v1213_v23, 7 }
 0x166   : > { %v1132_v62 = vpop.f32.mrf.mxu2 }
 0x167   : > { %v1133_v55 = vadd.f32 %v2757_v15, %v1132_v62  ;;  %v1141_v3 = vpop.f32.mrf.mxu3  ;;  %v1323_v30 = vrot.slane %v2835_v61, 7  ;;  %1422 = vrot.lane.b32.xlu2 %v2835_v61, %s2312_s19  ;;  %v1371_v7 = vrot.slane %v2835_v61, 1  ;;  %v1262_v61 = vand.u32 7, %v2675_v5  ;;  %v1496_v62 = vld [vmem:[%s3390_s3 + $0x38] sm:$0xff] }
 0x168   : > { %v1142_v10 = vadd.f32 %v2757_v15, %v1141_v3  ;;  %v1123_v16 = vpop.f32.mrf.mxu0  ;;  %v1495_v3 = vld [vmem:[%s3390_s3 + $0x30] sm:$0xff]  ;;  %1538 = vmatpush.msra.mxu1 %v1496_v62 }
 0x169   : > { %v1156_v18 = vmax.f32 %v1133_v55, 0.0  ;;  %v1124_v19 = vadd.f32 %v2757_v15, %v1123_v16  ;;  %v1380_v8 = vsel %vm796_vm0, %v1370_v36, %v1371_v7  ;;  %v2856_v20 = vsel %vm699_vm9, %v1322_v28, %v1323_v30 }
 0x16a   : > { %v1159_v13 = vmax.f32 %v1142_v10, 0.0  ;;  %v1402_v34 = vsel %vm2837_vm12, 0.0, %v1380_v8  ;;  %v1355_v57 = vsel %vm2846_vm13, 0.0, %v2856_v20  ;;  %v1269_v8 = vand.u32 7, %v2523_v33  ;;  %1539 = vmatpush.msra.mxu1 %v1495_v3 }
 0x16b   : > { %1173 = vst.msk [vmem:[#allocation2 + $0x60] sm:$0xff] %vm1160_vm6, %v1156_v18  ;;  %v1153_v40 = vmax.f32 %v1124_v19, 0.0  ;;  %1452 = vrot.lane.b32.xlu1 %v1402_v34, %s3364_s20  ;;  %vm2950_vm5 = vcmp.eq.s32.totalorder %v1262_v61, 0  ;;  %vm1366_vm12 = vcmp.eq.s32.totalorder %v1262_v61, 7 }
 0x16c   : > { %1176 = vst.msk [vmem:[#allocation2 + $0x78] sm:$0xff] %vm1160_vm6, %v1159_v13  ;;  %v1494_v13 = vld [vmem:[%s3390_s3 + $0x28] sm:$0xff]  ;;  %vm2954_vm7 = vcmp.eq.s32.totalorder %v1269_v8, 0  ;;  %vm1367_vm10 = vcmp.eq.s32.totalorder %v1269_v8, 7 }
 0x16d   : > { %1170 = vst.msk [vmem:[#allocation2 + $0x48] sm:$0xff] %vm1160_vm6, %v1153_v40  ;;  %1540 = vmatpush.msra.mxu1 %v1494_v13  ;;  %v1745_v40 = vld [vmem:[%s3406_s5 + $0xb8] sm:$0xff] }
 0x16e   : > { %1799 = vmatpush.msrb.mxu3 %v1745_v40  ;;  %v1631_v40 = vand.u32 3, %v2472_v11 }
 0x16f   : > { %v1135_v4 = vpop.f32.mrf.mxu2 }
 0x170   : > { %v1136_v25 = vadd.f32 %v2757_v15, %v1135_v4 }
 0x172   : > { %v1157_v26 = vmax.f32 %v1136_v25, 0.0  ;;  %v1744_v25 = vld [vmem:[%s3406_s5 + $0xb0] sm:$0xff] }
 0x173   : > { %v1191_v28 = vld [vmem:[#allocation2 + $0x70] ss:$2 sm:$0xff]  ;;  %v1207_v36 = vld [vmem:[#allocation2 + $0x71] ss:$2 sm:$0xff]  ;;  %1800 = vmatpush.msrb.mxu3 %v1744_v25 }
 0x174   : > { %1174 = vst.msk [vmem:[#allocation2 + $0x68] sm:$0xff] %vm1160_vm6, %v1157_v26  ;;  %v1185_v15 = vld [vmem:[#allocation2 + $0x40] ss:$2 sm:$0xff]  ;;  %v1201_v37 = vld [vmem:[#allocation2 + $0x41] ss:$2 sm:$0xff]  ;;  %v1215_v42 = vmax.f32 %v1191_v28, %v1207_v36  ;;  %v1728_v25 = vld [vmem:[%s3406_s5 + $0x30] sm:$0xff] }
 0x175   : > { %v1212_v43 = vmax.f32 %v1185_v15, %v1201_v37  ;;  %v1490_v37 = vld [vmem:[%s3390_s3 + $0x8] sm:$0xff] }
 0x176   : > { %v1327_v46 = vrot.slane %v1215_v42, 7  ;;  %v1375_v32 = vrot.slane %v1215_v42, 1 }
 0x177   : > { %v1324_v24 = vrot.slane %v1212_v43, 7  ;;  %1424 = vrot.lane.b32.xlu1 %v1212_v43, %s2312_s19  ;;  %v1372_v51 = vrot.slane %v1212_v43, 1 }
 0x178   : > { %v2902_v0 = vsel %vm699_vm9, %v1327_v46, %v1320_v14  ;;  %v1383_v56 = vsel %vm796_vm0, %v1375_v32, %v1368_v17  ;;  %v1491_v17 = vld [vmem:[%s3390_s3 + $0x10] sm:$0xff] }
 0x179   : > { %v1378_v58 = vsel %vm796_vm0, %v1372_v51, %v1373_v52  ;;  %v1379_v60 = vsel %vm796_vm0, %v1371_v7, %v1372_v51  ;;  %v1352_v14 = vsel %vm2886_vm15, 0.0, %v2902_v0  ;;  %v2932_v5 = vsel %vm699_vm9, %v1323_v30, %v1324_v24 }
 0x17a   : > { %v1404_v63 = vsel %vm2880_vm14, 0.0, %v1378_v58  ;;  %v1403_v55 = vsel %vm2894_vm1, 0.0, %v1379_v60  ;;  %v2936_v7 = vsel %vm699_vm9, %v1324_v24, %v1325_v53  ;;  %v1356_v18 = vsel %vm2904_vm2, 0.0, %v2932_v5 }
 0x17b   : > { %1456 = vrot.lane.b32.xlu2 %v1404_v63, %s3364_s20  ;;  %1454 = vrot.lane.b32.xlu0 %v1403_v55, %s3364_s20  ;;  %v1189_v10 = vld [vmem:[#allocation2 + $0x60] ss:$2 sm:$0xff]  ;;  %v1205_v16 = vld [vmem:[#allocation2 + $0x61] ss:$2 sm:$0xff]  ;;  %v1357_v19 = vsel %vm2908_vm3, 0.0, %v2936_v7  ;;  %v1407_v36 = vsel %vm1367_vm10, 0.0, %v1383_v56 }
 0x17c   : > { %v1214_v30 = vmax.f32 %v1189_v10, %v1205_v16  ;;  %vm1505_vm14 = vcmask 785408   ;;  %vm1480_vm15 = vcmask 523264   ;;  %v3052_v7 = vld [vmem:[%s3405_s4] ss:$0 sm:$0xff]  ;;  %vm3190_vm3 = vcmp.eq.s32.totalorder %v1631_v40, 0 }
 0x17d   : > { %v1738_v56 = vld [vmem:[%s3406_s5 + $0x80] sm:$0xff] }
 0x17e   : > { %v1374_v34 = vrot.slane %v1214_v30, 1  ;;  %v1326_v4 = vrot.slane %v1214_v30, 7 }
 0x180   : > { %v1377_v33 = vsel %vm796_vm0, %v1373_v52, %v1374_v34  ;;  %v2962_v27 = vsel %vm699_vm9, %v1325_v53, %v1326_v4  ;;  %v2966_v29 = vsel %vm699_vm9, %v1326_v4, %v1327_v46  ;;  %v1376_v28 = vsel %vm796_vm0, %v1374_v34, %v1375_v32 }
 0x181   : > { %v1405_v26 = vsel %vm1365_vm4, 0.0, %v1377_v33  ;;  %v1358_v31 = vsel %vm2950_vm5, 0.0, %v2962_v27  ;;  %v1359_v35 = vsel %vm2954_vm7, 0.0, %v2966_v29  ;;  %v1406_v15 = vsel %vm1366_vm12, 0.0, %v1376_v28  ;;  %v1743_v33 = vld [vmem:[%s3406_s5 + $0xa8] sm:$0xff]  ;;  %v1742_v27 = vld [vmem:[%s3406_s5 + $0xa0] sm:$0xff] }
 0x182   : > { %1458 = vrot.lane.b32.xlu1 %v1405_v26, %s3364_s20  ;;  %1801 = vmatpush.msrb.mxu3 %v1743_v33  ;;  %v1741_v29 = vld [vmem:[%s3406_s5 + $0x98] sm:$0xff]  ;;  %v1740_v26 = vld [vmem:[%s3406_s5 + $0x90] sm:$0xff] }
 0x183   : > { %1428 = vrot.lane.b32.xlu2 %v1214_v30, %s2312_s19  ;;  %1426 = vrot.lane.b32.xlu0 %v1213_v23, %s2312_s19  ;;  %v1493_v23 = vld [vmem:[%s3390_s3 + $0x20] sm:$0xff] }
 0x184   : > { %1541 = vmatpush.msra.mxu1 %v1493_v23  ;;  %1802 = vmatpush.msrb.mxu3 %v1742_v27 }
 0x186   : > { %1542 = vmatpush.msra.mxu1 %v1492_v59  ;;  %1803 = vmatpush.msrb.mxu3 %v1741_v29 }
 0x188   : > { %1543 = vmatpush.msra.mxu1 %v1491_v17  ;;  %1804 = vmatpush.msrb.mxu3 %v1740_v26  ;;  %v1727_v26 = vld [vmem:[%s3406_s5 + $0x28] sm:$0xff] }
 0x18a   : > { %1430 = vrot.lane.b32.xlu1 %v1215_v42, %s2312_s19  ;;  %1544 = vmatpush.msra.mxu1 %v1490_v37  ;;  %v1489_v42 = vld [vmem:[%s3390_s3] sm:$0xff]  ;;  %s3292_s19 = sand.u32 1, %s2297_s22  }
 0x18b   : > { %1462 = vrot.lane.b32.xlu2 %v1407_v36, %s3364_s20  ;;  %1460 = vrot.lane.b32.xlu0 %v1406_v15, %s3364_s20  ;;  %s3366_s18 = sshll.u32 %s3292_s19, 3  ;;  %s1923_s1 = scalar_lea.sflag [#allocation7], %s3292_s19 }
 0x18c   : > { %1545 = vmatpush.msra.mxu1 %v1489_v42  ;;  %v1610_v42 = vand.u32 3, %v2438_v1  ;;  %s428_s0 = scalar_lea.vmem [#allocation8], %s3366_s18 }
 0x18d   : > { %s1940_s17 = sshll.u32 %s428_s0, 4  ;;  %s1941_s17 = int_to_ptr.vmem [resolvable:$true] %s1940_s17 }
 0x18e   : > { %vm3186_vm2 = vcmp.eq.s32.totalorder %v1610_v42, 0 }
 0x191   : > { %v1417_v6 = vpop.permute.xlu2 %1416 }
 0x192   : > { %v1472_v43 = vsel %vm1160_vm6, %v1352_v14, %v1417_v6  ;;  %v1617_v6 = vand.u32 3, %v2441_v2 }
 0x194   : > { %vm3099_vm8 = vcmp.eq.s32.totalorder %v1617_v6, 0  ;;  %vm3132_vm11 = vcmp.eq.s32.totalorder %v1617_v6, 3  ;;  %v1724_v6 = vld [vmem:[%s3406_s5 + $0x10] sm:$0xff] }
 0x1b5   : > { %v1451_v24 = vpop.permute.xlu2 %1450 }
 0x1b9   : > { %v1419_v21 = vpop.permute.xlu1 %1418 }
 0x1ba   : > { %v1473_v49 = vsel %vm1160_vm6, %v1353_v22, %v1419_v21 }
 0x1bb   : > { %v1482_v51 = vsel %vm1480_vm15, %v1473_v49, %v1451_v24 }
 0x1bd   : > { %v1449_v44 = vpop.permute.xlu0 %1448 }
 0x1be   : > { %v1481_v46 = vsel %vm1480_vm15, %v1472_v43, %v1449_v44 }
 0x1bf   : > { %2087 = vmatmul.msk.f32.vlgmr.msra.gmra.mxu1 %vm1505_vm14, %v1481_v46 }
 0x1c1   : > { %v1423_v12 = vpop.permute.xlu2 %1422 }
 0x1c2   : > { %v1475_v48 = vsel %vm1160_vm6, %v1355_v57, %v1423_v12 }
 0x1c7   : > { %2088 = vmatmul.msk.f32.gmra.mxu1 %vm1505_vm14, %v1482_v51 }
 0x1c9   : > { %v1421_v52 = vpop.permute.xlu0 %1420 }
 0x1ca   : > { %v1474_v38 = vsel %vm1160_vm6, %v1354_v50, %v1421_v52 }
 0x1d5   : > { %v1457_v50 = vpop.permute.xlu2 %1456 }
 0x1dd   : > { %v1453_v0 = vpop.permute.xlu1 %1452  ;;  %v1429_v54 = vpop.permute.xlu2 %1428 }
 0x1de   : > { %v1483_v53 = vsel %vm1480_vm15, %v1474_v38, %v1453_v0  ;;  %v1478_v62 = vsel %vm1160_vm6, %v1358_v31, %v1429_v54  ;;  %v1735_v54 = vld [vmem:[%s3406_s5 + $0x68] sm:$0xff] }
 0x1df   : > { %2089 = vmatmul.msk.f32.gmra.mxu1 %vm1505_vm14, %v1483_v53 }
 0x1e5   : > { %v1463_v3 = vpop.permute.xlu2 %1462 }
 0x1e9   : > { %v1425_v41 = vpop.permute.xlu1 %1424 }
 0x1ea   : > { %v1476_v47 = vsel %vm1160_vm6, %v1356_v18, %v1425_v41 }
 0x1eb   : > { %v1485_v60 = vsel %vm1480_vm15, %v1476_v47, %v1457_v50  ;;  %v1624_v50 = vand.u32 3, %v2636_v39 }
 0x1ed   : > { %v1455_v22 = vpop.permute.xlu0 %1454  ;;  %vm3139_vm13 = vcmp.eq.s32.totalorder %v1624_v50, 0  ;;  %vm3176_vm1 = vcmp.eq.s32.totalorder %v1624_v50, 3  ;;  %v1853_v50 = vld [vmem:[%s3358_s7 + $0x68] sm:$0xff] }
 0x1ee   : > { %v1484_v58 = vsel %vm1480_vm15, %v1475_v48, %v1455_v22 }
 0x1ef   : > { %2090 = vmatmul.msk.f32.gmra.mxu1 %vm1505_vm14, %v1484_v58 }
 0x1f4   : > { %v1459_v57 = vpop.permute.xlu1 %1458 }
 0x1f5   : > { %v1427_v9 = vpop.permute.xlu0 %1426 }
 0x1f6   : > { %v1477_v20 = vsel %vm1160_vm6, %v1357_v19, %v1427_v9  ;;  %v1736_v9 = vld [vmem:[%s3406_s5 + $0x70] sm:$0xff] }
 0x1f7   : > { %2091 = vmatmul.msk.f32.gmra.mxu1 %vm1505_vm14, %v1485_v60  ;;  %v1486_v61 = vsel %vm1480_vm15, %v1477_v20, %v1459_v57  ;;  %v1737_v60 = vld [vmem:[%s3406_s5 + $0x78] sm:$0xff] }
 0x1f8   : > { %1762 = vmatpush.msrb.mxu2 %v1737_v60  ;;  %v1852_v60 = vld [vmem:[%s3358_s7 + $0x60] sm:$0xff] }
 0x1fa   : > { %1763 = vmatpush.msrb.mxu2 %v1736_v9  ;;  %v1851_v9 = vld [vmem:[%s3358_s7 + $0x58] sm:$0xff] }
 0x1fc   : > { %v1431_v55 = vpop.permute.xlu1 %1430  ;;  %1764 = vmatpush.msrb.mxu2 %v1735_v54  ;;  %v1850_v54 = vld [vmem:[%s3358_s7 + $0x50] sm:$0xff] }
 0x1fd   : > { %v1461_v14 = vpop.permute.xlu0 %1460  ;;  %v1479_v45 = vsel %vm1160_vm6, %v1359_v35, %v1431_v55  ;;  %v1739_v35 = vld [vmem:[%s3406_s5 + $0x88] sm:$0xff]  ;;  %vm1678_vm6 = vcmp.eq.s32.totalorder %v1610_v42, 3 }
 0x1fe   : > { %v1487_v63 = vsel %vm1480_vm15, %v1478_v62, %v1461_v14  ;;  %v1488_v5 = vsel %vm1480_vm15, %v1479_v45, %v1463_v3  ;;  %1805 = vmatpush.msrb.mxu3 %v1739_v35  ;;  %v1734_v62 = vld [vmem:[%s3406_s5 + $0x60] sm:$0xff] }
 0x1ff   : > { %2092 = vmatmul.msk.f32.gmra.mxu1 %vm1505_vm14, %v1486_v61  ;;  %1765 = vmatpush.msrb.mxu2 %v1734_v62 }
 0x200   : > { %1806 = vmatpush.msrb.mxu3 %v1738_v56 }
 0x207   : > { %2093 = vmatmul.msk.f32.gmra.mxu1 %vm1505_vm14, %v1487_v63  ;;  %v1848_v63 = vld [vmem:[%s3358_s7 + $0x40] sm:$0xff] }
 0x20f   : > { %2094 = vmatmul.msk.f32.gmra.mxu1 %vm1505_vm14, %v1488_v5 }
 0x23c   : > { %v1547_v10 = vpop.f32.mrf.mxu1 }
 0x23d   : > { %v1548_v16 = vadd.f32 %v3052_v7, %v1547_v10  ;;  %v1733_v10 = vld [vmem:[%s3406_s5 + $0x58] sm:$0xff] }
 0x23e   : > { %1766 = vmatpush.msrb.mxu2 %v1733_v10 }
 0x23f   : > { %v1571_v18 = vmax.f32 %v1548_v16, 0.0 }
 0x241   : > { %1579 = vst.msk [vmem:[#allocation3] sm:$0xff] %vm1480_vm15, %v1571_v18 }
 0x244   : > { %v1550_v19 = vpop.f32.mrf.mxu1 }
 0x245   : > { %v1551_v30 = vadd.f32 %v3052_v7, %v1550_v19 }
 0x247   : > { %v1572_v8 = vmax.f32 %v1551_v30, 0.0 }
 0x249   : > { %1580 = vst.msk [vmem:[#allocation3 + $0x8] sm:$0xff] %vm1480_vm15, %v1572_v8  ;;  %v1731_v8 = vld [vmem:[%s3406_s5 + $0x48] sm:$0xff] }
 0x250   : > { %v1587_v13 = vld [vmem:[#allocation3] ss:$2 sm:$0xff]  ;;  %v1595_v34 = vld [vmem:[#allocation3 + $0x1] ss:$2 sm:$0xff] }
 0x251   : > { %v3061_v4 = vmax.f32 %v1587_v13, %v1595_v34  ;;  %v1730_v13 = vld [vmem:[%s3406_s5 + $0x40] sm:$0xff]  ;;  %v1729_v34 = vld [vmem:[%s3406_s5 + $0x38] sm:$0xff] }
 0x253   : > { %1706 = vrot.lane.b32.xlu0 %v3061_v4, %s3407_s16  ;;  %v1658_v21 = vrot.slane %v3061_v4, 7  ;;  %v1682_v49 = vrot.slane %v3061_v4, 1 }
 0x25c   : > { %v1553_v31 = vpop.f32.mrf.mxu1 }
 0x25d   : > { %v1554_v32 = vadd.f32 %v3052_v7, %v1553_v31 }
 0x25f   : > { %v1573_v28 = vmax.f32 %v1554_v32, 0.0  ;;  %v1726_v32 = vld [vmem:[%s3406_s5 + $0x20] sm:$0xff] }
 0x261   : > { %1581 = vst.msk [vmem:[#allocation3 + $0x10] sm:$0xff] %vm1480_vm15, %v1573_v28  ;;  %v1889_v28 = vld [vmem:[#allocation5 + $0x40] sm:$0xff] }
 0x26c   : > { %v1556_v36 = vpop.f32.mrf.mxu1 }
 0x26d   : > { %v1557_v15 = vadd.f32 %v3052_v7, %v1556_v36 }
 0x26f   : > { %v1574_v23 = vmax.f32 %v1557_v15, 0.0  ;;  %v1725_v15 = vld [vmem:[%s3406_s5 + $0x18] sm:$0xff] }
 0x271   : > { %1582 = vst.msk [vmem:[#allocation3 + $0x18] sm:$0xff] %vm1480_vm15, %v1574_v23 }
 0x274   : > { %v1559_v59 = vpop.f32.mrf.mxu1 }
 0x275   : > { %v1560_v17 = vadd.f32 %v3052_v7, %v1559_v59 }
 0x277   : > { %v1575_v37 = vmax.f32 %v1560_v17, 0.0 }
 0x278   : > { %v1589_v43 = vld [vmem:[#allocation3 + $0x10] ss:$2 sm:$0xff]  ;;  %v1597_v44 = vld [vmem:[#allocation3 + $0x11] ss:$2 sm:$0xff] }
 0x279   : > { %1583 = vst.msk [vmem:[#allocation3 + $0x20] sm:$0xff] %vm1480_vm15, %v1575_v37  ;;  %v1603_v46 = vmax.f32 %v1589_v43, %v1597_v44  ;;  %v1723_v43 = vld [vmem:[%s3406_s5 + $0x8] sm:$0xff] }
 0x27b   : > { %1708 = vrot.lane.b32.xlu1 %v1603_v46, %s3407_s16  ;;  %v1683_v24 = vrot.slane %v1603_v46, 1  ;;  %v1659_v2 = vrot.slane %v1603_v46, 7  ;;  %v1722_v46 = vld [vmem:[%s3406_s5] sm:$0xff] }
 0x27c   : > { %v1562_v52 = vpop.f32.mrf.mxu1 }
 0x27d   : > { %v1563_v38 = vadd.f32 %v3052_v7, %v1562_v52  ;;  %v1688_v0 = vsel %vm796_vm0, %v1682_v49, %v1683_v24  ;;  %v3112_v53 = vsel %vm699_vm9, %v1658_v21, %v1659_v2 }
 0x27e   : > { %v1698_v12 = vsel %vm1678_vm6, 0.0, %v1688_v0  ;;  %v1675_v48 = vsel %vm3099_vm8, 0.0, %v3112_v53 }
 0x27f   : > { %v1576_v22 = vmax.f32 %v1563_v38, 0.0  ;;  %2095 = vmatmul.msk.f32.vlgmr.msrb.gmra.mxu3 %vm1480_vm15, %v1698_v12  ;;  %v3237_v12 = vld [vmem:[%s3357_s6] ss:$0 sm:$0xff] }
 0x281   : > { %1584 = vst.msk [vmem:[#allocation3 + $0x28] sm:$0xff] %vm1480_vm15, %v1576_v22 }
 0x284   : > { %v1565_v58 = vpop.f32.mrf.mxu1 }
 0x285   : > { %v1566_v41 = vadd.f32 %v3052_v7, %v1565_v58 }
 0x287   : > { %v1577_v47 = vmax.f32 %v1566_v41, 0.0  ;;  %v1855_v41 = vld [vmem:[%s3358_s7 + $0x78] sm:$0xff] }
 0x288   : > { %v1591_v20 = vld [vmem:[#allocation3 + $0x20] ss:$2 sm:$0xff]  ;;  %v1599_v57 = vld [vmem:[#allocation3 + $0x21] ss:$2 sm:$0xff]  ;;  %1860 = vmatpush.msra.mxu3 %v1855_v41 }
 0x289   : > { %1585 = vst.msk [vmem:[#allocation3 + $0x30] sm:$0xff] %vm1480_vm15, %v1577_v47  ;;  %v1604_v61 = vmax.f32 %v1591_v20, %v1599_v57  ;;  %v1854_v47 = vld [vmem:[%s3358_s7 + $0x70] sm:$0xff] }
 0x28a   : > { %1861 = vmatpush.msra.mxu3 %v1854_v47 }
 0x28b   : > { %1710 = vrot.lane.b32.xlu2 %v1604_v61, %s3407_s16  ;;  %v1684_v14 = vrot.slane %v1604_v61, 1  ;;  %v1660_v55 = vrot.slane %v1604_v61, 7 }
 0x28c   : > { %v1568_v45 = vpop.f32.mrf.mxu1  ;;  %1862 = vmatpush.msra.mxu3 %v1853_v50 }
 0x28d   : > { %v1569_v3 = vadd.f32 %v3052_v7, %v1568_v45  ;;  %v1687_v5 = vsel %vm796_vm0, %v1683_v24, %v1684_v14  ;;  %v1663_v16 = vsel %vm699_vm9, %v1659_v2, %v1660_v55  ;;  %v1732_v7 = vld [vmem:[%s3406_s5 + $0x50] sm:$0xff] }
 0x28e   : > { %v1699_v18 = vsel %vm3132_vm11, 0.0, %v1687_v5  ;;  %v1676_v19 = vsel %vm3139_vm13, 0.0, %v1663_v16  ;;  %1767 = vmatpush.msrb.mxu2 %v1732_v7  ;;  %1863 = vmatpush.msra.mxu3 %v1852_v60  ;;  %v1845_v16 = vld [vmem:[%s3358_s7 + $0x28] sm:$0xff]  ;;  %v1843_v7 = vld [vmem:[%s3358_s7 + $0x18] sm:$0xff] }
 0x28f   : > { %v1578_v30 = vmax.f32 %v1569_v3, 0.0  ;;  %2096 = vmatmul.msk.f32.gmra.mxu3 %vm1480_vm15, %v1699_v18  ;;  %v1846_v3 = vld [vmem:[%s3358_s7 + $0x30] sm:$0xff] }
 0x290   : > { %1768 = vmatpush.msrb.mxu2 %v1731_v8  ;;  %1864 = vmatpush.msra.mxu3 %v1851_v9  ;;  %v1842_v8 = vld [vmem:[%s3358_s7 + $0x10] sm:$0xff] }
 0x291   : > { %1586 = vst.msk [vmem:[#allocation3 + $0x38] sm:$0xff] %vm1480_vm15, %v1578_v30 }
 0x292   : > { %1769 = vmatpush.msrb.mxu2 %v1730_v13  ;;  %1865 = vmatpush.msra.mxu3 %v1850_v54  ;;  %v1841_v13 = vld [vmem:[%s3358_s7 + $0x8] sm:$0xff] }
 0x294   : > { %1770 = vmatpush.msrb.mxu2 %v1729_v34  ;;  %v1840_v34 = vld [vmem:[%s3358_s7] sm:$0xff] }
 0x296   : > { %1771 = vmatpush.msrb.mxu2 %v1728_v25  ;;  %v1895_v25 = vld [vmem:[#allocation5 + $0x70] sm:$0xff] }
 0x298   : > { %v1593_v33 = vld [vmem:[#allocation3 + $0x30] ss:$2 sm:$0xff]  ;;  %v1601_v27 = vld [vmem:[#allocation3 + $0x31] ss:$2 sm:$0xff]  ;;  %1772 = vmatpush.msrb.mxu2 %v1727_v26 }
 0x299   : > { %v1605_v29 = vmax.f32 %v1593_v33, %v1601_v27  ;;  %v1894_v33 = vld [vmem:[#allocation5 + $0x68] sm:$0xff]  ;;  %v1893_v27 = vld [vmem:[#allocation5 + $0x60] sm:$0xff]  ;;  %v1891_v26 = vld [vmem:[#allocation5 + $0x50] sm:$0xff] }
 0x29a   : > { %1773 = vmatpush.msrb.mxu2 %v1726_v32 }
 0x29b   : > { %v1661_v35 = vrot.slane %v1605_v29, 7  ;;  %1712 = vrot.lane.b32.xlu0 %v1605_v29, %s3407_s16  ;;  %v1685_v11 = vrot.slane %v1605_v29, 1  ;;  %v1892_v29 = vld [vmem:[#allocation5 + $0x58] sm:$0xff]  ;;  %s1938_s16 = scalar_lea.hbm %s3362_s11, %s2101_s28 }
 0x29c   : > { %1774 = vmatpush.msrb.mxu2 %v1725_v15  ;;  %v1888_v15 = vld [vmem:[#allocation5 + $0x38] sm:$0xff]  ;;  %s1942_s18 = sshll.u32 %s1938_s16, 4  ;;  %s1943_s18 = int_to_ptr.hbm [resolvable:$true] %s1942_s18 }
 0x29d   : > { %v1686_v36 = vsel %vm796_vm0, %v1684_v14, %v1685_v11  ;;  %v1665_v23 = vsel %vm699_vm9, %v1661_v35, %v1658_v21  ;;  %v1662_v59 = vsel %vm699_vm9, %v1660_v55, %v1661_v35  ;;  %vm1681_vm9 = vcmp.eq.s32.totalorder %v1631_v40, 3  ;;  %v1849_v14 = vld [vmem:[%s3358_s7 + $0x48] sm:$0xff]  ;;  %v1847_v55 = vld [vmem:[%s3358_s7 + $0x38] sm:$0xff]  ;;  %s2221_s2 = sshra.s32 %s1943_s18, 4  ;;  %s2222_s2 = int_to_ptr.hbm [resolvable:$true] %s2221_s2 }
 0x29e   : > { %v1700_v17 = vsel %vm3176_vm1, 0.0, %v1686_v36  ;;  %v1674_v37 = vsel %vm3186_vm2, 0.0, %v1665_v23  ;;  %v1677_v42 = vsel %vm3190_vm3, 0.0, %v1662_v59  ;;  %1775 = vmatpush.msrb.mxu2 %v1724_v6  ;;  %v1689_v44 = vsel %vm796_vm0, %v1685_v11, %v1682_v49  ;;  %1866 = vmatpush.msra.mxu3 %v1849_v14  ;;  %v1896_v40 = vld [vmem:[#allocation5 + $0x78] sm:$0xff]  ;;  %v1890_v11 = vld [vmem:[#allocation5 + $0x48] sm:$0xff]  ;;  %v1887_v23 = vld [vmem:[#allocation5 + $0x30] sm:$0xff]  ;;  %p2228_p3 = scmp.lt.s32.totalorder %s2222_s2, %s3362_s11 }
 0x29f   : > { %2097 = vmatmul.msk.f32.gmra.mxu3 %vm1480_vm15, %v1700_v17  ;;  %v1701_v21 = vsel %vm1681_vm9, 0.0, %v1689_v44  ;;  %v1886_v59 = vld [vmem:[#allocation5 + $0x28] sm:$0xff]  ;;  %v1885_v17 = vld [vmem:[#allocation5 + $0x20] sm:$0xff]  ;;  %v1883_v44 = vld [vmem:[#allocation5 + $0x10] sm:$0xff]  ;;  %s2223_s3 = scalar_lea.hbm %s2222_s2, 8 }
 0x2a0   : > { %1776 = vmatpush.msrb.mxu2 %v1723_v43  ;;  %1867 = vmatpush.msra.mxu3 %v1848_v63  ;;  %p2224_p0 = scmp.ne.s32.totalorder %s2222_s2, %s2223_s3  ;;  %p2229_p4 = scmp.lt.s32.totalorder %s2227_s25, %s2223_s3 }
 0x2a2   : > { %1777 = vmatpush.msrb.mxu2 %v1722_v46  ;;  %1868 = vmatpush.msra.mxu3 %v1847_v55  ;;  %p2225_p1 = pnand %p2224_p0, %p2417_p5  ;;  %p2230_p7 = por %p2229_p4, %p2228_p3 }
 0x2a4   : > { %1869 = vmatpush.msra.mxu3 %v1846_v3  ;;  %1901 = vmatpush.msra.mxu2 %v1896_v40  ;;  %p2226_p2 = pneg %p2225_p1 }
 0x2a6   : > { %1870 = vmatpush.msra.mxu3 %v1845_v16  ;;  %1902 = vmatpush.msra.mxu2 %v1895_v25  ;;  %p2231_p8 = pnand %p2230_p7, %p2226_p2 }
 0x2a7   : > { %2098 = vmatmul.msk.f32.gmra.mxu3 %vm1480_vm15, %v1701_v21 }
 0x2a8   : > { %1903 = vmatpush.msra.mxu2 %v1894_v33 }
 0x2aa   : > { %1904 = vmatpush.msra.mxu2 %v1893_v27 }
 0x2ac   : > { %1905 = vmatpush.msra.mxu2 %v1892_v29 }
 0x2ae   : > { %1906 = vmatpush.msra.mxu2 %v1891_v26 }
 0x2b0   : > { %1907 = vmatpush.msra.mxu2 %v1890_v11 }
 0x2b2   : > { %1908 = vmatpush.msra.mxu2 %v1889_v28 }
 0x2b4   : > { %1909 = vmatpush.msra.mxu2 %v1888_v15 }
 0x2b6   : > { %1910 = vmatpush.msra.mxu2 %v1887_v23 }
 0x2b8   : > { %1911 = vmatpush.msra.mxu2 %v1886_v59 }
 0x2ba   : > { %1912 = vmatpush.msra.mxu2 %v1885_v17 }
 0x2c5   : > { %v1707_v24 = vpop.permute.xlu0 %1706 }
 0x2c6   : > { %v1718_v2 = vsel %vm1480_vm15, %v1674_v37, %v1707_v24  ;;  %v1884_v37 = vld [vmem:[#allocation5 + $0x18] sm:$0xff] }
 0x2c7   : > { %1778 = vmatmul.f32.vlgmr.msrb.gmra.mxu2 %v1718_v2 }
 0x2c8   : > { %1913 = vmatpush.msra.mxu2 %v1884_v37 }
 0x2ca   : > { %1914 = vmatpush.msra.mxu2 %v1883_v44 }
 0x2e5   : > { %v1711_v4 = vpop.permute.xlu2 %1710 }
 0x2e6   : > { %v1720_v49 = vsel %vm1480_vm15, %v1676_v19, %v1711_v4  ;;  %v1844_v19 = vld [vmem:[%s3358_s7 + $0x20] sm:$0xff] }
 0x2e7   : > { %1871 = vmatpush.msra.mxu3 %v1844_v19  ;;  %v1881_v4 = vld [vmem:[#allocation5] sm:$0xff] }
 0x2e9   : > { %1872 = vmatpush.msra.mxu3 %v1843_v7 }
 0x2eb   : > { %1873 = vmatpush.msra.mxu3 %v1842_v8 }
 0x2ed   : > { %v1709_v52 = vpop.permute.xlu1 %1708  ;;  %1874 = vmatpush.msra.mxu3 %v1841_v13 }
 0x2ee   : > { %v1719_v1 = vsel %vm1480_vm15, %v1675_v48, %v1709_v52 }
 0x2ef   : > { %1781 = vmatmul.f32.gmra.mxu2 %v1719_v1  ;;  %1875 = vmatpush.msra.mxu3 %v1840_v34  ;;  %v1882_v1 = vld [vmem:[#allocation5 + $0x8] sm:$0xff] }
 0x2f0   : > { %1915 = vmatpush.msra.mxu2 %v1882_v1 }
 0x2f2   : > { %1916 = vmatpush.msra.mxu2 %v1881_v4 }
 0x2f7   : > { %1784 = vmatmul.f32.gmra.mxu2 %v1720_v49  ;;  %v2175_v49 = vld [vmem:[%s3359_s8] ss:$0 sm:$0xff] }
 0x302   : > { %v1808_v53 = vpop.f32.mrf.mxu3 }
 0x30d   : > { %v1713_v38 = vpop.permute.xlu0 %1712 }
 0x30e   : > { %v1721_v0 = vsel %vm1480_vm15, %v1677_v42, %v1713_v38 }
 0x30f   : > { %1787 = vmatmul.f32.gmra.mxu2 %v1721_v0 }
 0x312   : > { %v1811_v61 = vpop.f32.mrf.mxu3 }
 0x322   : > { %v1814_v10 = vpop.f32.mrf.mxu3 }
 0x32a   : > { %v1817_v32 = vpop.f32.mrf.mxu3 }
 0x34a   : > { %v1779_v22 = vpop.f32.mrf.mxu2 }
 0x34b   : > { %v1780_v51 = vadd.f32 %v3237_v12, %v1779_v22 }
 0x34d   : > { %v1809_v58 = vadd.f32 %v1808_v53, %v1780_v51 }
 0x34f   : > { %v1820_v48 = vmax.f32 %v1809_v58, 0.0 }
 0x351   : > { %1824 = vst [vmem:[#allocation4] sm:$0xff] %v1820_v48 }
 0x372   : > { %v1782_v20 = vpop.f32.mrf.mxu2 }
 0x373   : > { %v1783_v57 = vadd.f32 %v3237_v12, %v1782_v20 }
 0x375   : > { %v1812_v39 = vadd.f32 %v1811_v61, %v1783_v57 }
 0x377   : > { %v1821_v62 = vmax.f32 %v1812_v39, 0.0 }
 0x379   : > { %1825 = vst [vmem:[#allocation4 + $0x8] sm:$0xff] %v1821_v62 }
 0x37a   : > { %v1785_v45 = vpop.f32.mrf.mxu2 }
 0x37b   : > { %v1786_v5 = vadd.f32 %v3237_v12, %v1785_v45 }
 0x37d   : > { %v1815_v18 = vadd.f32 %v1814_v10, %v1786_v5 }
 0x37f   : > { %v1822_v30 = vmax.f32 %v1815_v18, 0.0 }
 0x381   : > { %1826 = vst [vmem:[#allocation4 + $0x10] sm:$0xff] %v1822_v30 }
 0x392   : > { %v1788_v31 = vpop.f32.mrf.mxu2 }
 0x393   : > { %v1789_v35 = vadd.f32 %v3237_v12, %v1788_v31 }
 0x395   : > { %v1818_v56 = vadd.f32 %v1817_v32, %v1789_v35 }
 0x397   : > { %v1823_v36 = vmax.f32 %v1818_v56, 0.0 }
 0x399   : > { %1827 = vst [vmem:[#allocation4 + $0x18] sm:$0xff] %v1823_v36 }
 0x3a0   : > { %v1828_v42 = vld [vmem:[#allocation4] ss:$4 sm:$0xff]  ;;  %v1830_v6 = vld [vmem:[#allocation4 + $0x1] ss:$4 sm:$0xff]  ;;  %v1833_v46 = vld [vmem:[#allocation4 + $0x2] ss:$4 sm:$0xff] }
 0x3a1   : > { %v1831_v43 = vadd.f32 %v1830_v6, %v1828_v42  ;;  %v1836_v24 = vld [vmem:[#allocation4 + $0x3] ss:$4 sm:$0xff] }
 0x3a3   : > { %v1834_v21 = vadd.f32 %v1833_v46, %v1831_v43 }
 0x3a5   : > { %v1837_v2 = vadd.f32 %v1836_v24, %v1834_v21 }
 0x3a7   : > { %v1838_v52 = vmul.f32 0.25, %v1837_v2 }
 0x3a9   : > { %1876 = vmatmul.f32.vlgmr.msra.gmra.mxu3 %v1838_v52  ;;  %1839 = vst [vmem:[%s428_s0] sm:$0xff] %v1838_v52 }
 0x42c   : > { %v1877_v38 = vpop.f32.mrf.mxu3 }
 0x42d   : > { %v1878_v0 = vadd.f32 %v2175_v49, %v1877_v38 }
 0x42f   : > { %v1880_v12 = vmax.f32 %v1878_v0, 0.0 }
 0x431   : > { %1917 = vmatmul.f32.vlgmr.msra.gmra.mxu2 %v1880_v12 }
 0x432   : > { %2234 = shalt.err (!%p2231_p8)
}
 0x433   : > { %2115 = dma.vmem_to_hbm [thread:$0]  (%p2417_p5), %s1941_s17, 128, %s1943_s18, %s1923_s1   ;;  %v2176_v22 = vld [vmem:[%s3361_s10] ss:$0 sm:$0xff] }
 0x434   : > { %s1952_s15 = scalar_lea.hbm %s3363_s12, %s2101_s28  ;;  %s3420_s4 = sshll.u32 %s3292_s19, 3 }
 0x435   : > { %s435_s2 = scalar_lea.vmem [#allocation9], %s3420_s4  ;;  %s1956_s5 = sshll.u32 %s1952_s15, 4  ;;  %s1957_s5 = int_to_ptr.hbm [resolvable:$true] %s1956_s5 }
 0x436   : > { %s1954_s3 = sshll.u32 %s435_s2, 4  ;;  %s1928_s26 = scalar_lea.sflag [#allocation10], %s3292_s19  ;;  %s1955_s3 = int_to_ptr.vmem [resolvable:$true] %s1954_s3 }
 0x437   : > { %s2249_s1 = sshra.s32 %s1957_s5, 4  ;;  %s2255_s25 = scalar_lea.hbm %s3363_s12, 16  ;;  %s2250_s1 = int_to_ptr.hbm [resolvable:$true] %s2249_s1 }
 0x438   : > { %s2251_s18 = scalar_lea.hbm %s2250_s1, 8  ;;  %p2256_p12 = scmp.lt.s32.totalorder %s2250_s1, %s3363_s12 }
 0x439   : > { %p2252_p9 = scmp.ne.s32.totalorder %s2250_s1, %s2251_s18  ;;  %p2257_p13 = scmp.lt.s32.totalorder %s2255_s25, %s2251_s18 }
 0x43b   : > { %p2253_p10 = pnand %p2252_p9, %p2417_p5  ;;  %p2258_p0 = por %p2257_p13, %p2256_p12 }
 0x43d   : > { %p2254_p11 = pneg %p2253_p10 }
 0x43f   : > { %p2259_p1 = pnand %p2258_p0, %p2254_p11 }
 0x4b4   : > { %v1918_v51 = vpop.f32.mrf.mxu2 }
 0x4b5   : > { %v1919_v53 = vadd.f32 %v2176_v22, %v1918_v51 }
 0x4b7   : > { %1921 = vst [vmem:[%s435_s2] sm:$0xff] %v1919_v53 }
 0x4b8   : > { %2262 = shalt.err (!%p2259_p1)
}
 0x4b9   : > { %2116 = dma.vmem_to_hbm [thread:$0]  (%p2417_p5), %s1955_s3, 128, %s1957_s5, %s1928_s26  }
 0x4ba PF: > { %p2132_p2 = scmp.ge.s32.totalorder %s2305_s24, 2  ;;  %s1968_s19 = sand.u32 1, %s2293_s21  }
 0x4bb   : > { %s1969_s15 = scalar_lea.sflag [#allocation7], %s1968_s19 }
 0x4bc   : > { %p2124_p3 = pnand %p2132_p2, %p2421_p6 }
 0x4be   : > { %p2125_p4 = pneg %p2124_p3 }
 0x4c0   : > { %2284 = dma.done.wait (%p2125_p4), %s1969_s15, 128  }
 0x4c1   : > { %2286 = vsyncadd (%p2125_p4), %s1969_s15, 4294967168  ;;  %s1979_s16 = scalar_lea.sflag [#allocation10], %s1968_s19 }
 0x4c2   : > { %2288 = dma.done.wait (%p2125_p4), %s1979_s16, 128  }
 0x4c3   : > { %2290 = vsyncadd (%p2125_p4), %s1979_s16, 4294967168  ;;  %p27_p5 = scmp.ge.s32.totalorder %s2404_s27, 4   ;;  %s3421_s21 = smov %s2297_s22 }
 0x4c4   : > { %s3422_s22 = smov %s2301_s23  ;;  %s3423_s23 = smov %s2415_s30 }
 0x4c5   : > { %s3424_s24 = smov %s2404_s27  ;;  %29 = sbr.rel (!%p27_p5) target bundleno = 13 (0xd), region = 146 }
 0x4ca   :  { %1985 = vsyncpa [#allocation6], 1 }
 0x4cb   :  { %1987 = vsyncpa [#allocation6 + $0x1], 1 }
 0x4cc   :  { %1988 = vsyncpa [#allocation7], 1 }
 0x4cd   :  { %1990 = vsyncpa [#allocation7 + $0x1], 1 }
 0x4ce   :  { %1991 = vsyncpa [#allocation10], 1 }
 0x4cf   :  { %1993 = vsyncpa [#allocation10 + $0x1], 1 }

</bundles_post_ra>
